<compile_context>
chip_gen: v7x
topology: tpu7x:2x2x1
jax: 0.10.0
libtpu: 0.0.40
codegen_flags: <defaults>
</compile_context>

<pallas_src>
import jax
import jax.numpy as jnp
from jax import lax
from jax.experimental import pallas as pl
from jax.experimental.pallas import tpu as pltpu

F_IN = 1000          # divisible by 8 -> valid sublane dim, no padding needed
F_OUT = 1000
F_OUT_PAD = 1024     # pad to a multiple of 128 for clean N tiling / dense vst
TN = 512             # 2 tiles -> grid=(2,): one per TC on v7x, minimal overhead
EPS = 1e-5


def _fc_bn_kernel(x_ref, w_ref, gamma_ref, beta_ref, o_ref):
    # Linear on this N-tile: [B, F_IN] @ [F_IN, TN].
    # (No bias: it cancels exactly under training-mode BN's mean subtraction.)
    y = jnp.dot(x_ref[...], w_ref[...], preferred_element_type=jnp.float32)

    # BatchNorm training-mode stats over the batch axis (biased variance).
    mean = jnp.mean(y, axis=0, keepdims=True)             # [1, TN]
    centered = y - mean
    var = jnp.mean(centered * centered, axis=0, keepdims=True)
    inv_std = lax.rsqrt(var + EPS)

    # Fold gamma/beta/mean/inv_std into one per-feature scale/shift.
    scale = gamma_ref[...] * inv_std                       # [1, TN]
    shift = beta_ref[...] - mean * scale                   # [1, TN]
    o_ref[...] = (y * scale + shift).astype(o_ref.dtype)


def prepare_params(weight, gamma, beta):
    """One-time conversion of PyTorch-layout params to kernel layout.

    weight: [F_OUT, F_IN] -> [F_IN, F_OUT_PAD] (transposed + zero-padded)
    gamma/beta: [F_OUT] -> [1, F_OUT_PAD]
    The Linear bias is intentionally omitted: training-mode BN subtracts the
    per-feature mean, so a per-feature constant added before BN has no effect
    on the output.
    """
    w_t = jnp.zeros((F_IN, F_OUT_PAD), jnp.float32).at[:, :F_OUT].set(weight.T)
    g_p = jnp.ones((1, F_OUT_PAD), jnp.float32).at[0, :F_OUT].set(gamma)
    be_p = jnp.zeros((1, F_OUT_PAD), jnp.float32).at[0, :F_OUT].set(beta)
    return w_t, g_p, be_p


def fc_syncbn(x, w_t, g_p, be_p):
    """x: [B, F_IN] f32; params in kernel layout (see prepare_params)."""
    B = x.shape[0]
    grid = (F_OUT_PAD // TN,)   # (2,) -> one tile per TensorCore on v7x

    out_pad = pl.pallas_call(
        _fc_bn_kernel,
        out_shape=jax.ShapeDtypeStruct((B, F_OUT_PAD), jnp.float32),
        grid=grid,
        in_specs=[
            pl.BlockSpec((B, F_IN), lambda j: (0, 0)),        # x (resident)
            pl.BlockSpec((F_IN, TN), lambda j: (0, j)),       # weight half
            pl.BlockSpec((1, TN), lambda j: (0, j)),          # gamma tile
            pl.BlockSpec((1, TN), lambda j: (0, j)),          # beta tile
        ],
        out_specs=pl.BlockSpec((B, TN), lambda j: (0, j)),
        compiler_params=pltpu.CompilerParams(
            dimension_semantics=("parallel",),
            vmem_limit_bytes=16 << 20,
        ),
    )(x, w_t, g_p, be_p)

    # Padded lanes 1000..1023 hold exact zeros; slice them off for module-
    # faithful output shape. (Downstream fusion could keep the padded slab.)
    return out_pad[:, :F_OUT]


def reference(x, weight, bias, gamma, beta):
    y = x @ weight.T + bias
    mean = jnp.mean(y, axis=0, keepdims=True)
    var = jnp.mean((y - mean) ** 2, axis=0, keepdims=True)
    return gamma * (y - mean) / jnp.sqrt(var + EPS) + beta


if __name__ == "__main__":
    key = jax.random.PRNGKey(0)
    kx, kw, kb, kg, kbe = jax.random.split(key, 5)

    B = 8
    x = jax.random.normal(kx, (B, F_IN), dtype=jnp.float32)

    # Deterministic parameter init matching nn.Linear / BatchNorm shapes.
    bound = 1.0 / (F_IN ** 0.5)
    weight = jax.random.uniform(kw, (F_OUT, F_IN), minval=-bound, maxval=bound,
                                dtype=jnp.float32)
    bias = jax.random.uniform(kb, (F_OUT,), minval=-bound, maxval=bound,
                              dtype=jnp.float32)
    gamma = 1.0 + 0.1 * jax.random.normal(kg, (F_OUT,), dtype=jnp.float32)
    beta = 0.1 * jax.random.normal(kbe, (F_OUT,), dtype=jnp.float32)

    # One-time parameter preparation (corresponds to storing the weight
    # pre-transposed/padded at module init). Bias is dropped (BN cancels it).
    w_t, g_p, be_p = prepare_params(weight, gamma, beta)
    w_t, g_p, be_p = jax.block_until_ready((w_t, g_p, be_p))

    out = fc_syncbn(x, w_t, g_p, be_p)
    out = jax.block_until_ready(out)

    # Reference includes the bias to show the kernel's bias-elimination is
    # exactly equivalent under training-mode BN.
    ref = reference(x, weight, bias, gamma, beta)
    assert out.shape == (B, F_OUT)
    assert jnp.allclose(out, ref, atol=2e-3, rtol=2e-3), "mismatch vs reference"

    print("KERNEL_OK")
</pallas_src>

<mosaic_0001>
module attributes {stable_mosaic.version = 11 : i64} {
  func.func @_fc_bn_kernel(%arg0: i32, %arg1: memref<8x1000xf32, #tpu.memory_space<vmem>>, %arg2: memref<1000x512xf32, #tpu.memory_space<vmem>>, %arg3: memref<1x512xf32, #tpu.memory_space<vmem>>, %arg4: memref<1x512xf32, #tpu.memory_space<vmem>>, %arg5: memref<8x512xf32, #tpu.memory_space<vmem>>) attributes {dimension_semantics = [#tpu.dimension_semantics<parallel>], iteration_bounds = array<i64: 2>, scalar_prefetch = 0 : i64, scratch_operands = 0 : i64, tpu.core_type = #tpu.core_type<tc>, window_params = [{pipeline_mode = #tpu.pipeline_mode<synchronous>, transform_indices = @transform_0, window_bounds = array<i64: 8, 1000>}, {transform_indices = @transform_1, window_bounds = array<i64: 1000, 512>}, {transform_indices = @transform_2, window_bounds = array<i64: 1, 512>}, {transform_indices = @transform_3, window_bounds = array<i64: 1, 512>}, {transform_indices = @transform_4, window_bounds = array<i64: 8, 512>}]} {
    %c0 = arith.constant 0 : index
    %c0_0 = arith.constant 0 : index
    %0 = vector.load %arg1[%c0, %c0_0] : memref<8x1000xf32, #tpu.memory_space<vmem>>, vector<8x1000xf32>
    %c0_1 = arith.constant 0 : index
    %c0_2 = arith.constant 0 : index
    %1 = vector.load %arg2[%c0_1, %c0_2] : memref<1000x512xf32, #tpu.memory_space<vmem>>, vector<1000x512xf32>
    %cst = arith.constant dense<0.000000e+00> : vector<8x512xf32>
    %2 = tpu.matmul %0, %1, %cst {dimension_numbers = #tpu.dot_dimension_numbers<[1], [0], [0], [1], [0, 0, 1, 1], [], []>} : vector<8x1000xf32>, vector<1000x512xf32>, vector<8x512xf32> -> vector<8x512xf32>
    %cst_3 = arith.constant dense<0.000000e+00> : vector<512xf32>
    %3 = vector.multi_reduction <add>, %2, %cst_3 [0] : vector<8x512xf32> to vector<512xf32>
    %4 = vector.shape_cast %3 : vector<512xf32> to vector<1x512xf32>
    %cst_4 = arith.constant 8.000000e+00 : f32
    %5 = vector.broadcast %cst_4 : f32 to vector<1x512xf32>
    %6 = arith.divf %4, %5 : vector<1x512xf32>
    %7 = vector.broadcast %6 : vector<1x512xf32> to vector<8x512xf32>
    %8 = arith.subf %2, %7 : vector<8x512xf32>
    %9 = arith.mulf %8, %8 : vector<8x512xf32>
    %cst_5 = arith.constant dense<0.000000e+00> : vector<512xf32>
    %10 = vector.multi_reduction <add>, %9, %cst_5 [0] : vector<8x512xf32> to vector<512xf32>
    %11 = vector.shape_cast %10 : vector<512xf32> to vector<1x512xf32>
    %cst_6 = arith.constant 8.000000e+00 : f32
    %12 = vector.broadcast %cst_6 : f32 to vector<1x512xf32>
    %13 = arith.divf %11, %12 : vector<1x512xf32>
    %cst_7 = arith.constant 9.99999974E-6 : f32
    %14 = vector.broadcast %cst_7 : f32 to vector<1x512xf32>
    %15 = arith.addf %13, %14 : vector<1x512xf32>
    %16 = math.rsqrt %15 : vector<1x512xf32>
    %c0_8 = arith.constant 0 : index
    %c0_9 = arith.constant 0 : index
    %17 = vector.load %arg3[%c0_8, %c0_9] : memref<1x512xf32, #tpu.memory_space<vmem>>, vector<1x512xf32>
    %18 = arith.mulf %17, %16 : vector<1x512xf32>
    %c0_10 = arith.constant 0 : index
    %c0_11 = arith.constant 0 : index
    %19 = vector.load %arg4[%c0_10, %c0_11] : memref<1x512xf32, #tpu.memory_space<vmem>>, vector<1x512xf32>
    %20 = arith.mulf %6, %18 : vector<1x512xf32>
    %21 = arith.subf %19, %20 : vector<1x512xf32>
    %22 = vector.broadcast %18 : vector<1x512xf32> to vector<8x512xf32>
    %23 = arith.mulf %2, %22 : vector<8x512xf32>
    %24 = vector.broadcast %21 : vector<1x512xf32> to vector<8x512xf32>
    %25 = arith.addf %23, %24 : vector<8x512xf32>
    %c0_12 = arith.constant 0 : index
    %c0_13 = arith.constant 0 : index
    %26 = vector.load %arg5[%c0_12, %c0_13] : memref<8x512xf32, #tpu.memory_space<vmem>>, vector<8x512xf32>
    tpu.vector_store %arg5[%c0_12, %c0_13], %25 {strides = array<i32>} : memref<8x512xf32, #tpu.memory_space<vmem>>, vector<8x512xf32>,
    return
  }
  func.func @transform_0(%arg0: i32) -> (i32, i32) {
    %c0_i32 = arith.constant 0 : i32
    %c0_i32_0 = arith.constant 0 : i32
    %c0_i32_1 = arith.constant 0 : i32
    return %c0_i32, %c0_i32_0 : i32, i32
  }
  func.func @transform_1(%arg0: i32) -> (i32, i32) {
    %c0_i32 = arith.constant 0 : i32
    %c0_i32_0 = arith.constant 0 : i32
    return %c0_i32, %arg0 : i32, i32
  }
  func.func @transform_2(%arg0: i32) -> (i32, i32) {
    %c0_i32 = arith.constant 0 : i32
    %c0_i32_0 = arith.constant 0 : i32
    return %c0_i32, %arg0 : i32, i32
  }
  func.func @transform_3(%arg0: i32) -> (i32, i32) {
    %c0_i32 = arith.constant 0 : i32
    %c0_i32_0 = arith.constant 0 : i32
    return %c0_i32, %arg0 : i32, i32
  }
  func.func @transform_4(%arg0: i32) -> (i32, i32) {
    %c0_i32 = arith.constant 0 : i32
    %c0_i32_0 = arith.constant 0 : i32
    return %c0_i32, %arg0 : i32, i32
  }
}

</mosaic_0001>

<bundles_post_ra>
// kernel: tpu_custom_call.1
= control target key start
LH: loop header
LB: loop body
LE: loop exit
PB: predicated region body
PF: predicated region fallthrough
CT: control target
= control target key end

     0   :  { %s3385_s0 = inlined_call_operand.hbm [shape: f32[8,1000], index: 0, kind: input, shape index: {}]   ;;  %s3386_s1 = inlined_call_operand.hbm [shape: f32[1000,1024], index: 1, kind: input, shape index: {}]   ;;  %s3387_s2 = inlined_call_operand.hbm [shape: f32[1,1024], index: 2, kind: input, shape index: {}]   ;;  %s3388_s3 = inlined_call_operand.hbm [shape: f32[1,1024], index: 3, kind: input, shape index: {}]   ;;  %s3389_s4 = inlined_call_operand.hbm [shape: f32[8,1024], index: 4, kind: output, shape index: {}]  }
   0x1   :  { %3401 = sst [smem:[#allocation17_spill]] %s3386_s1 }
   0x2   :  { %9 = vsyncpa [#allocation3], 0 }
   0x3   :  { %10 = vsyncpa [#allocation6], 0 }
   0x4   :  { %12 = vsyncpa [#allocation6 + $0x1], 0 }
   0x5   :  { %13 = vsyncpa [#allocation9], 0 }
   0x6   :  { %15 = vsyncpa [#allocation9 + $0x1], 0 }
   0x7   :  { %16 = vsyncpa [#allocation4], 0 }
   0x8   :  { %18 = vsyncpa [#allocation4 + $0x1], 0  ;;  %s2564_s15 = smov 0   ;;  %s2566_s16 = smov 0  }
   0x9   :  { %s2568_s17 = smov 0   ;;  %s2570_s18 = smov 0  }
   0xa LB: > { %3402 = sst [smem:[#allocation15_spill]] %s2524_s17  ;;  %s2585_s19 = sadd.s32 1, %s2528_s18   ;;  %s2528_s18 = sphi %s2570_s18, %s3428_s18   ;;  %s2524_s17 = sphi %s2568_s17, %s3425_s17   ;;  %s2520_s16 = sphi %s2566_s16, %s3427_s16   ;;  %s2516_s15 = sphi %s2564_s15, %s3426_s15  }
   0xb   : > { %s52_s20 = sadd.s32 1, %s2524_s17  ;;  %s49_s21 = ssub.s32 %s2528_s18, %s2585_s19 }
   0xc   : > { %p3390_p0 = scmp.ne.s32.totalorder %s2524_s17, %s2520_s16  ;;  %p50_p1 = scmp.eq.s32.totalorder %s49_s21, 0 }
   0xd   : > { %p60_p2 = scmp.eq.s32.totalorder %s2528_s18, 0  ;;  %p2288_p4 = scmp.lt.s32.totalorder %s2528_s18, 2 }
   0xe   : > { %s2596_s22 = scalar_select %p50_p1, %s2524_s17, %s52_s20  }
   0xf   : > { %p61_p5 = por %p60_p2, %p3390_p0  ;;  %s178_s23 = sand.u32 1, %s2528_s18  }
  0x10   : > { %3403 = sst [smem:[#allocation16_spill]] %s2596_s22  ;;  %s2603_s24 = sand.u32 1, %s2524_s17  }
  0x11   : > { %s2255_s25 = smul.u32 4000, %s2603_s24  ;;  %s1743_s26 = sshll.u32 %s2528_s18, 9 }
  0x12   : > { %s3404_s1 = sld [smem:[#allocation17_spill]]  ;;  %p2612_p6 = pnand %p2288_p4, %p61_p5 }
  0x13   : > { %s182_s5 = scalar_lea.vmem [#allocation5], %s2255_s25  ;;  %s2618_s7 = scalar_lea.sflag [#allocation6], %s178_s23 }
  0x14   : > { %s3405_s30 = scalar_select %p2612_p6, 1, 0 }
  0x15   : > { %s189_s6 = sshll.u32 %s182_s5, 4  ;;  %p2624_p8 = pneg %p2612_p6  ;;  %s2616_s6 = int_to_ptr.vmem [resolvable:$true] %s189_s6 }
  0x17   : > { %s3406_s9 = scalar_select %p2624_p8, 1, 0 }
  0x18   : > { %s2610_s29 = scalar_lea.hbm %s3404_s1, %s1743_s26  ;;  %s2341_s12 = scalar_lea.hbm %s3404_s1, 128000 }
  0x19   : > { %s2336_s8 = scalar_lea.hbm %s2610_s29, 64000  ;;  %p2342_p11 = scmp.lt.u32.totalorder %s2610_s29, %s3404_s1 }
  0x1a   : > { %p2337_p7 = scmp.ne.s32.totalorder %s2610_s29, %s2336_s8  ;;  %p2343_p12 = scmp.lt.u32.totalorder %s2341_s12, %s2336_s8 }
  0x1b   : > { %p2345_p1 = scmp.lt.u32.totalorder %s2336_s8, %s2610_s29 }
  0x1c   : > { %p2339_p9 = pnand %p2624_p8, %p2337_p7  ;;  %p2344_p13 = por %p2343_p12, %p2342_p11 }
  0x1e   : > { %p2340_p10 = pneg %p2339_p9  ;;  %p2346_p2 = por %p2345_p1, %p2344_p13 }
  0x20   : > { %p2347_p4 = pnand %p2346_p2, %p2340_p10 }
  0x22   : > { %2350 = shalt.err (!%p2347_p4)
}
  0x23   : > { %s2351_s20 = scalar_lea.vmem %s2616_s6, 64000  ;;  %s2530_s21 = smov [#allocation5]  }
  0x24   : > { %p2352_p5 = scmp.ne.s32.totalorder %s2616_s6, %s2351_s20  ;;  %s2356_s23 = sshll.u32 %s2530_s21, 4  ;;  %s2357_s23 = int_to_ptr.vmem [resolvable:$false] %s2356_s23 }
  0x25   : > { %s2358_s25 = scalar_lea.vmem %s2357_s23, 128000  ;;  %p2359_p3 = scmp.lt.s32.totalorder %s2616_s6, %s2357_s23 }
  0x26   : > { %p2354_p7 = pnand %p2352_p5, %p2624_p8  ;;  %p2360_p0 = scmp.lt.s32.totalorder %s2358_s25, %s2351_s20 }
  0x28   : > { %p2355_p9 = pneg %p2354_p7  ;;  %p2361_p11 = por %p2360_p0, %p2359_p3 }
  0x2a   : > { %p2362_p12 = pnand %p2361_p11, %p2355_p9 }
  0x2c   : > { %2365 = shalt.err (!%p2362_p12)
}
  0x2d   : > { %s2531_s26 = smov 1024   ;;  %s2532_s27 = smov 512  }
  0x2e   : > { %s2533_s28 = smov 32   ;;  %s2649_s5 = sadd.s32 4294967295, %s2528_s18  }
  0x2f   : > { %2276 = dma.hbm_to_vmem [thread:$0]  (!%p2612_p6), %s2610_s29, 64000, %s2616_s6, %s2618_s7, %s2531_s26, %s2532_s27, %s2533_s28  }
  0x30   : > { %s1719_s8 = sadd.s32 4294967294, %s2528_s18   ;;  %p65_p0 = scmp.ne.s32.totalorder %s2520_s16, %s2516_s15 }
  0x31   : > { %p3393_p3 = scmp.eq.s32.totalorder %s2649_s5, 0  ;;  %p141_p10 = scmp.eq.s32.totalorder %s2649_s5, 1 }
  0x32   : > { %p147_p13 = scmp.eq.s32.totalorder %s1719_s8, 1  ;;  %p1720_p1 = scmp.ge.s32.totalorder %s2528_s18, 1 }
  0x33   : > { %p2659_p2 = por %p3393_p3, %p65_p0  ;;  %p3408_p4 = scmp.ne.s32.totalorder %s2524_s17, %s2520_s16 }
  0x34   : > { %p2670_p7 = por %p147_p13, %p65_p0  ;;  %p154_p9 = scmp.lt.s32.totalorder %s2528_s18, 3 }
  0x35   : > { %s3407_s10 = scalar_select %p2659_p2, 1, 0 }
  0x36   : > { %p2666_p5 = por %p141_p10, %p3408_p4  ;;  %p2675_p11 = pnand %p1720_p1, %p154_p9 }
  0x37   : > { %s3410_s6 = scalar_select %p2670_p7, 1, 0 }
  0x38   : > { %s3409_s29 = scalar_select %p2666_p5, 1, 0 }
  0x39   : > { %s3411_s11 = scalar_select %p2675_p11, 1, 0 }
  0x3a   : > { %s2534_s12 = smov [#allocation2]   ;;  %s3391_s14 = sshll.u32 %s2603_s24, 2 }
  0x3b   : > { %s167_s13 = sshll.u32 %s2534_s12, 4  ;;  %p2269_p12 = pneg %p2675_p11  ;;  %s168_s13 = int_to_ptr.vmem [resolvable:$true] %s167_s13 }
  0x3c   : > { %s1744_s20 = sshll.u32 %s2528_s18, 6  ;;  %s203_s21 = scalar_lea.vmem [#allocation7], %s3391_s14 }
  0x3d   : > { %s211_s23 = sshll.u32 %s203_s21, 4  ;;  %p2687_p0 = pnand %p2269_p12, %p3393_p3  ;;  %s2698_s23 = int_to_ptr.vmem [resolvable:$true] %s211_s23 }
  0x3e   : > { %s2696_s28 = scalar_lea.hbm %s3387_s2, %s1744_s20  ;;  %s2366_s1 = scalar_lea.hbm %s3385_s0, 1024 }
  0x3f   : > { %p2367_p10 = scmp.ne.s32.totalorder %s3385_s0, %s2366_s1  ;;  %p2368_p13 = pneg %p2687_p0 }
  0x40   : > { %p2373_p9 = scmp.lt.u32.totalorder %s2366_s1, %s3385_s0 }
  0x41   : > { %p2369_p1 = pnand %p2368_p13, %p2367_p10 }
  0x43   : > { %p2370_p4 = pneg %p2369_p1 }
  0x45   : > { %p2375_p12 = pnand %p2373_p9, %p2370_p4 }
  0x47   : > { %2378 = shalt.err (!%p2375_p12)
}
  0x48   : > { %s2379_s26 = scalar_lea.vmem %s168_s13, 1024  ;;  %p2387_p2 = scmp.lt.s32.totalorder %s168_s13, %s168_s13 }
  0x49   : > { %p2380_p3 = scmp.ne.s32.totalorder %s168_s13, %s2379_s26  ;;  %p2388_p11 = scmp.lt.s32.totalorder %s2379_s26, %s2379_s26 }
  0x4b   : > { %p2382_p7 = pnand %p2380_p3, %p2368_p13  ;;  %p2389_p6 = por %p2388_p11, %p2387_p2 }
  0x4d   : > { %p2383_p5 = pneg %p2382_p7 }
  0x4f   : > { %p2390_p8 = pnand %p2389_p6, %p2383_p5 }
  0x51   : > { %2393 = shalt.err (!%p2390_p8)
}
  0x52   : > { %2272 = dma.hbm_to_vmem [thread:$0]  (!%p2687_p0), %s3385_s0, 1024, %s168_s13, [#allocation3]  }
  0x53   : > { %s2394_s1 = scalar_lea.hbm %s2696_s28, 64  ;;  %p3413_p3 = scmp.ne.s32.totalorder %s3406_s9, 0 }
  0x54   : > { %p2395_p10 = scmp.ne.s32.totalorder %s2696_s28, %s2394_s1  ;;  %s2399_s8 = scalar_lea.hbm %s3387_s2, 128 }
  0x55   : > { %p2400_p6 = scmp.lt.u32.totalorder %s2696_s28, %s3387_s2  ;;  %p2401_p8 = scmp.lt.u32.totalorder %s2399_s8, %s2394_s1 }
  0x56   : > { %p2397_p7 = pnand %p2395_p10, %p3413_p3  ;;  %p2403_p5 = scmp.lt.u32.totalorder %s2394_s1, %s2696_s28 }
  0x57   : > { %p2402_p2 = por %p2401_p8, %p2400_p6 }
  0x58   : > { %p2398_p13 = pneg %p2397_p7 }
  0x59   : > { %p2404_p11 = por %p2403_p5, %p2402_p2 }
  0x5b   : > { %p2405_p1 = pnand %p2404_p11, %p2398_p13 }
  0x5d   : > { %2408 = shalt.err (!%p2405_p1)
}
  0x5e   : > { %s2409_s13 = scalar_lea.vmem %s2698_s23, 64  ;;  %s2535_s21 = smov [#allocation7]  }
  0x5f   : > { %p2410_p0 = scmp.ne.s32.totalorder %s2698_s23, %s2409_s13  ;;  %s2414_s26 = sshll.u32 %s2535_s21, 4  ;;  %s2415_s26 = int_to_ptr.vmem [resolvable:$false] %s2414_s26 }
  0x60   : > { %s2416_s14 = scalar_lea.vmem %s2415_s26, 128  ;;  %p2417_p12 = scmp.lt.s32.totalorder %s2698_s23, %s2415_s26 }
  0x61   : > { %p2412_p4 = pnand %p2410_p0, %p3413_p3  ;;  %p2418_p10 = scmp.lt.s32.totalorder %s2416_s14, %s2409_s13 }
  0x63   : > { %p2413_p9 = pneg %p2412_p4  ;;  %p2419_p7 = por %p2418_p10, %p2417_p12 }
  0x65   : > { %p2420_p6 = pnand %p2419_p7, %p2413_p9 }
  0x67   : > { %2423 = shalt.err (!%p2420_p6)
}
  0x68   : > { %p3414_p13 = scmp.ne.s32.totalorder %s3405_s30, 0  ;;  %s2743_s17 = scalar_lea.hbm %s3388_s3, %s1744_s20 }
  0x69   : > { %s3415_s22 = sshll.u32 %s2603_s24, 2  ;;  %s219_s25 = scalar_lea.sflag [#allocation9], %s2603_s24 }
  0x6a   : > { %2279 = dma.hbm_to_vmem [thread:$0]  (!%p3414_p13), %s2696_s28, 64, %s2698_s23, %s2618_s7  }
  0x6b   : > { %s222_s8 = scalar_lea.vmem [#allocation8], %s3415_s22  ;;  %s2424_s13 = scalar_lea.hbm %s2743_s17, 64 }
  0x6c   : > { %s230_s12 = sshll.u32 %s222_s8, 4  ;;  %p2425_p8 = scmp.ne.s32.totalorder %s2743_s17, %s2424_s13  ;;  %s231_s12 = int_to_ptr.vmem [resolvable:$true] %s230_s12 }
  0x6d   : > { %s2429_s28 = scalar_lea.hbm %s3388_s3, 128  ;;  %p2430_p11 = scmp.lt.u32.totalorder %s2743_s17, %s3388_s3 }
  0x6e   : > { %p2427_p2 = pnand %p2425_p8, %p3413_p3  ;;  %p2431_p1 = scmp.lt.u32.totalorder %s2429_s28, %s2424_s13 }
  0x6f   : > { %p2433_p4 = scmp.lt.u32.totalorder %s2424_s13, %s2743_s17 }
  0x70   : > { %p2428_p5 = pneg %p2427_p2  ;;  %p2432_p0 = por %p2431_p1, %p2430_p11 }
  0x72   : > { %p2434_p9 = por %p2433_p4, %p2432_p0 }
  0x74   : > { %p2435_p12 = pnand %p2434_p9, %p2428_p5 }
  0x76   : > { %2438 = shalt.err (!%p2435_p12)
}
  0x77   : > { %s2439_s24 = scalar_lea.vmem %s231_s12, 64  ;;  %s2536_s26 = smov [#allocation8]  }
  0x78   : > { %p2440_p10 = scmp.ne.s32.totalorder %s231_s12, %s2439_s24  ;;  %s2444_s14 = sshll.u32 %s2536_s26, 4  ;;  %s2445_s14 = int_to_ptr.vmem [resolvable:$false] %s2444_s14 }
  0x79   : > { %s2446_s27 = scalar_lea.vmem %s2445_s14, 128  ;;  %p2447_p8 = scmp.lt.s32.totalorder %s231_s12, %s2445_s14 }
  0x7a   : > { %p2442_p7 = pnand %p2440_p10, %p3413_p3  ;;  %p2448_p2 = scmp.lt.s32.totalorder %s2446_s27, %s2439_s24 }
  0x7c   : > { %p2443_p6 = pneg %p2442_p7  ;;  %p2449_p13 = por %p2448_p2, %p2447_p8 }
  0x7e   : > { %p2450_p1 = pnand %p2449_p13, %p2443_p6 }
  0x80   : > { %2453 = shalt.err (!%p2450_p1)
}
  0x81   : > { %p3416_p11 = scmp.ne.s32.totalorder %s3405_s30, 0  ;;  %p3417_p5 = scmp.ne.s32.totalorder %s3411_s11, 0 }
  0x82   : > { %p3418_p0 = scmp.eq.s32.totalorder (!%p3417_p5), %s2649_s5, 0 }
  0x83   : > { %2282 = dma.hbm_to_vmem [thread:$0]  (!%p3416_p11), %s2743_s17, 64, %s231_s12, %s219_s25  }
  0x84   : > { %239 = sbr.rel (%p3417_p5) target bundleno = 705 (0x2c1), region = 36 }
  0x8b   : > { %2499 = dma.done.wait (%p3418_p0), [#allocation3], 1024   ;;  %p3419_p3 = pmov %p3418_p0 }
  0x8c   : > { %s245_s9 = sand.u32 1, %s2649_s5   ;;  %s2773_s1 = sand.u32 1, %s2520_s16  }
  0x8d   : > { %2501 = vsyncadd (%p3419_p3), [#allocation3], 4294966272  ;;  %s2256_s22 = smul.u32 4000, %s2773_s1  ;;  %s246_s30 = scalar_lea.sflag [#allocation6], %s245_s9 }
  0x8e   : > { %p3420_p13 = scmp.ne.s32.totalorder %s3407_s10, 0 }
  0x8f   : > { %s2776_s8 = scalar_lea.vmem [#allocation5], %s2256_s22 }
  0x90   : > { %2503 = dma.done.wait (%p3420_p13), %s246_s30, 64064  }
  0x91   : > { %2505 = vsyncadd (%p3420_p13), %s246_s30, 4294903232  ;;  %s1733_s11 = sshll.u32 %s2773_s1, 2  ;;  %s264_s12 = scalar_lea.sflag [#allocation9], %s2773_s1 }
  0x92   : > { %s2783_s17 = scalar_lea.vmem [#allocation7], %s1733_s11  ;;  %s2786_s25 = scalar_lea.vmem [#allocation8], %s1733_s11 }
  0x93   : > { %2507 = dma.done.wait (%p3420_p13), %s264_s12, 64  }
  0x94   : > { %2509 = vsyncadd (%p3420_p13), %s264_s12, 4294967232  ;;  %v315_v0 = vld [vmem:[%s2776_s8 + $0x8] sm:$0xff]  ;;  %v317_v2 = vld [vmem:[%s2776_s8 + $0x18] sm:$0xff]  ;;  %vm814_vm0 = vcmask 850944   ;;  %s1735_s10 = sshll.u32 %s2773_s1, 5  ;;  %s1746_s13 = sshll.u32 %s2649_s5, 9 }
  0x95   : > { %v319_v1 = vld [vmem:[%s2776_s8 + $0x28] sm:$0xff]  ;;  %v321_v4 = vld [vmem:[%s2776_s8 + $0x38] sm:$0xff]  ;;  %v314_v5 = vld [vmem:[%s2776_s8] sm:$0xff]  ;;  %s301_s7 = scalar_lea.vmem [#allocation10], %s1735_s10  ;;  %s3341_s21 = scalar_lea.hbm %s3389_s4, %s1746_s13 }
  0x96   : > { %v1747_v3 = vpack.c.bf16 %v319_v1, %v315_v0  ;;  %v318_v6 = vld [vmem:[%s2776_s8 + $0x20] sm:$0xff]  ;;  %v1995_v7 = vpack.c.bf16 %v321_v4, %v317_v2  ;;  %v316_v9 = vld [vmem:[%s2776_s8 + $0x10] sm:$0xff]  ;;  %v323_v11 = vld [vmem:[%s2776_s8 + $0x48] sm:$0xff]  ;;  %s1594_s23 = sshll.u32 %s301_s7, 4  ;;  %s1580_s5 = scalar_lea.sflag [#allocation4], %s2773_s1  ;;  %s3343_s23 = int_to_ptr.vmem [resolvable:$true] %s1594_s23 }
  0x97   : > { %v1749_v8 = vpack.c.bf16 %v318_v6, %v314_v5  ;;  %v320_v10 = vld [vmem:[%s2776_s8 + $0x30] sm:$0xff]  ;;  %v327_v13 = vld [vmem:[%s2776_s8 + $0x68] sm:$0xff]  ;;  %v325_v14 = vld [vmem:[%s2776_s8 + $0x58] sm:$0xff]  ;;  %s2454_s24 = scalar_lea.vmem %s3343_s23, 512  ;;  %p3421_p9 = scmp.ne.s32.totalorder %s3409_s29, 0 }
  0x98   : > { %1748 = vmatprep.subr.bf16.mxu0 %v1747_v3  ;;  %v1997_v12 = vpack.c.bf16 %v320_v10, %v316_v9  ;;  %v329_v15 = vld [vmem:[%s2776_s8 + $0x78] sm:$0xff]  ;;  %1996 = vmatprep.subr.bf16.mxu1 %v1995_v7  ;;  %v1751_v16 = vpack.c.bf16 %v327_v13, %v323_v11  ;;  %v322_v18 = vld [vmem:[%s2776_s8 + $0x40] sm:$0xff]  ;;  %v324_v20 = vld [vmem:[%s2776_s8 + $0x50] sm:$0xff]  ;;  %p2455_p4 = scmp.ne.s32.totalorder %s3343_s23, %s2454_s24  ;;  %s2538_s26 = smov [#allocation10]  }
  0x99   : > { %1750 = vmatpush1.bf16.msra.mxu0 %v1749_v8  ;;  %v1999_v17 = vpack.c.bf16 %v329_v15, %v325_v14  ;;  %v326_v19 = vld [vmem:[%s2776_s8 + $0x60] sm:$0xff]  ;;  %v328_v22 = vld [vmem:[%s2776_s8 + $0x70] sm:$0xff]  ;;  %v331_v23 = vld [vmem:[%s2776_s8 + $0x88] sm:$0xff]  ;;  %s2458_s14 = sshll.u32 %s2538_s26, 4  ;;  %s2459_s14 = int_to_ptr.vmem [resolvable:$false] %s2458_s14 }
  0x9a   : > { %1998 = vmatpush1.bf16.msra.mxu1 %v1997_v12  ;;  %v1753_v21 = vpack.c.bf16 %v326_v19, %v322_v18  ;;  %v335_v24 = vld [vmem:[%s2776_s8 + $0xa8] sm:$0xff]  ;;  %1752 = vmatprep.subr.bf16.mxu0 %v1751_v16  ;;  %v2001_v25 = vpack.c.bf16 %v328_v22, %v324_v20  ;;  %v333_v27 = vld [vmem:[%s2776_s8 + $0x98] sm:$0xff]  ;;  %v330_v29 = vld [vmem:[%s2776_s8 + $0x80] sm:$0xff]  ;;  %p2456_p12 = pnand %p2455_p4, %p3421_p9  ;;  %s2460_s27 = scalar_lea.vmem %s2459_s14, 1024 }
  0x9b   : > { %2000 = vmatprep.subr.bf16.mxu1 %v1999_v17  ;;  %v1755_v26 = vpack.c.bf16 %v335_v24, %v331_v23  ;;  %v337_v28 = vld [vmem:[%s2776_s8 + $0xb8] sm:$0xff]  ;;  %v334_v31 = vld [vmem:[%s2776_s8 + $0xa0] sm:$0xff]  ;;  %v332_v32 = vld [vmem:[%s2776_s8 + $0x90] sm:$0xff]  ;;  %p2461_p7 = scmp.lt.s32.totalorder %s3343_s23, %s2459_s14  ;;  %p2462_p6 = scmp.lt.s32.totalorder %s2460_s27, %s2454_s24 }
  0x9c   : > { %v2003_v30 = vpack.c.bf16 %v337_v28, %v333_v27  ;;  %v336_v33 = vld [vmem:[%s2776_s8 + $0xb0] sm:$0xff]  ;;  %v1757_v34 = vpack.c.bf16 %v334_v31, %v330_v29  ;;  %v339_v35 = vld [vmem:[%s2776_s8 + $0xc8] sm:$0xff]  ;;  %v341_v37 = vld [vmem:[%s2776_s8 + $0xd8] sm:$0xff]  ;;  %p2457_p10 = pneg %p2456_p12 }
  0x9d   : > { %1754 = vmatpush1.bf16.msra.mxu0 %v1753_v21  ;;  %v343_v36 = vld [vmem:[%s2776_s8 + $0xe8] sm:$0xff]  ;;  %v2005_v38 = vpack.c.bf16 %v336_v33, %v332_v32  ;;  %v345_v40 = vld [vmem:[%s2776_s8 + $0xf8] sm:$0xff]  ;;  %v338_v41 = vld [vmem:[%s2776_s8 + $0xc0] sm:$0xff]  ;;  %p2463_p8 = por %p2462_p6, %p2461_p7 }
  0x9e   : > { %2002 = vmatpush1.bf16.msra.mxu1 %v2001_v25  ;;  %1756 = vmatprep.subr.bf16.mxu0 %v1755_v26  ;;  %v1759_v39 = vpack.c.bf16 %v343_v36, %v339_v35  ;;  %v342_v42 = vld [vmem:[%s2776_s8 + $0xe0] sm:$0xff]  ;;  %v2007_v43 = vpack.c.bf16 %v345_v40, %v341_v37  ;;  %v340_v44 = vld [vmem:[%s2776_s8 + $0xd0] sm:$0xff]  ;;  %v347_v46 = vld [vmem:[%s2776_s8 + $0x108] sm:$0xff] }
  0x9f   : > { %2004 = vmatprep.subr.bf16.mxu1 %v2003_v30  ;;  %v344_v45 = vld [vmem:[%s2776_s8 + $0xf0] sm:$0xff]  ;;  %v351_v47 = vld [vmem:[%s2776_s8 + $0x128] sm:$0xff]  ;;  %v349_v48 = vld [vmem:[%s2776_s8 + $0x118] sm:$0xff]  ;;  %v1761_v50 = vpack.c.bf16 %v342_v42, %v338_v41  ;;  %p2464_p2 = pnand %p2463_p8, %p2457_p10 }
  0xa0   : > { %v353_v49 = vld [vmem:[%s2776_s8 + $0x138] sm:$0xff]  ;;  %v2009_v51 = vpack.c.bf16 %v344_v45, %v340_v44  ;;  %v1763_v52 = vpack.c.bf16 %v351_v47, %v347_v46  ;;  %v346_v53 = vld [vmem:[%s2776_s8 + $0x100] sm:$0xff]  ;;  %v348_v55 = vld [vmem:[%s2776_s8 + $0x110] sm:$0xff] }
  0xa1   : > { %1758 = vmatpush1.bf16.msra.mxu0 %v1757_v34  ;;  %v350_v54 = vld [vmem:[%s2776_s8 + $0x120] sm:$0xff]  ;;  %v2011_v56 = vpack.c.bf16 %v353_v49, %v349_v48  ;;  %v352_v57 = vld [vmem:[%s2776_s8 + $0x130] sm:$0xff]  ;;  %v355_v58 = vld [vmem:[%s2776_s8 + $0x148] sm:$0xff] }
  0xa2   : > { %2006 = vmatpush1.bf16.msra.mxu1 %v2005_v38  ;;  %1760 = vmatprep.subr.bf16.mxu0 %v1759_v39  ;;  %v359_v59 = vld [vmem:[%s2776_s8 + $0x168] sm:$0xff]  ;;  %v357_v60 = vld [vmem:[%s2776_s8 + $0x158] sm:$0xff]  ;;  %v1765_v62 = vpack.c.bf16 %v350_v54, %v346_v53  ;;  %v2013_v63 = vpack.c.bf16 %v352_v57, %v348_v55  ;;  %v354_v1 = vld [vmem:[%s2776_s8 + $0x140] sm:$0xff] }
  0xa3   : > { %2008 = vmatprep.subr.bf16.mxu1 %v2007_v43  ;;  %v361_v61 = vld [vmem:[%s2776_s8 + $0x178] sm:$0xff]  ;;  %v1767_v0 = vpack.c.bf16 %v359_v59, %v355_v58  ;;  %v358_v2 = vld [vmem:[%s2776_s8 + $0x160] sm:$0xff]  ;;  %v356_v3 = vld [vmem:[%s2776_s8 + $0x150] sm:$0xff] }
  0xa4   : > { %v2015_v4 = vpack.c.bf16 %v361_v61, %v357_v60  ;;  %v360_v5 = vld [vmem:[%s2776_s8 + $0x170] sm:$0xff]  ;;  %v363_v6 = vld [vmem:[%s2776_s8 + $0x188] sm:$0xff]  ;;  %v365_v8 = vld [vmem:[%s2776_s8 + $0x198] sm:$0xff]  ;;  %v1769_v10 = vpack.c.bf16 %v358_v2, %v354_v1 }
  0xa5   : > { %1762 = vmatpush1.bf16.msra.mxu0 %v1761_v50  ;;  %v367_v7 = vld [vmem:[%s2776_s8 + $0x1a8] sm:$0xff]  ;;  %v369_v9 = vld [vmem:[%s2776_s8 + $0x1b8] sm:$0xff]  ;;  %v2017_v11 = vpack.c.bf16 %v360_v5, %v356_v3  ;;  %v362_v13 = vld [vmem:[%s2776_s8 + $0x180] sm:$0xff] }
  0xa6   : > { %2010 = vmatpush1.bf16.msra.mxu1 %v2009_v51  ;;  %1764 = vmatprep.subr.bf16.mxu0 %v1763_v52  ;;  %v1771_v12 = vpack.c.bf16 %v367_v7, %v363_v6  ;;  %v366_v14 = vld [vmem:[%s2776_s8 + $0x1a0] sm:$0xff]  ;;  %v364_v15 = vld [vmem:[%s2776_s8 + $0x190] sm:$0xff]  ;;  %v2019_v16 = vpack.c.bf16 %v369_v9, %v365_v8  ;;  %v371_v18 = vld [vmem:[%s2776_s8 + $0x1c8] sm:$0xff] }
  0xa7   : > { %2012 = vmatprep.subr.bf16.mxu1 %v2011_v56  ;;  %v368_v17 = vld [vmem:[%s2776_s8 + $0x1b0] sm:$0xff]  ;;  %v375_v19 = vld [vmem:[%s2776_s8 + $0x1e8] sm:$0xff]  ;;  %v373_v20 = vld [vmem:[%s2776_s8 + $0x1d8] sm:$0xff]  ;;  %v1773_v22 = vpack.c.bf16 %v366_v14, %v362_v13 }
  0xa8   : > { %v377_v21 = vld [vmem:[%s2776_s8 + $0x1f8] sm:$0xff]  ;;  %v2021_v23 = vpack.c.bf16 %v368_v17, %v364_v15  ;;  %v1775_v24 = vpack.c.bf16 %v375_v19, %v371_v18  ;;  %v370_v25 = vld [vmem:[%s2776_s8 + $0x1c0] sm:$0xff]  ;;  %v372_v27 = vld [vmem:[%s2776_s8 + $0x1d0] sm:$0xff] }
  0xa9   : > { %1766 = vmatpush1.bf16.msra.mxu0 %v1765_v62  ;;  %v374_v26 = vld [vmem:[%s2776_s8 + $0x1e0] sm:$0xff]  ;;  %v2023_v28 = vpack.c.bf16 %v377_v21, %v373_v20  ;;  %v376_v29 = vld [vmem:[%s2776_s8 + $0x1f0] sm:$0xff]  ;;  %v379_v30 = vld [vmem:[%s2776_s8 + $0x208] sm:$0xff] }
  0xaa   : > { %2014 = vmatpush1.bf16.msra.mxu1 %v2013_v63  ;;  %1768 = vmatprep.subr.bf16.mxu0 %v1767_v0  ;;  %v383_v31 = vld [vmem:[%s2776_s8 + $0x228] sm:$0xff]  ;;  %v381_v32 = vld [vmem:[%s2776_s8 + $0x218] sm:$0xff]  ;;  %v1777_v34 = vpack.c.bf16 %v374_v26, %v370_v25  ;;  %v2025_v35 = vpack.c.bf16 %v376_v29, %v372_v27  ;;  %v378_v37 = vld [vmem:[%s2776_s8 + $0x200] sm:$0xff] }
  0xab   : > { %2016 = vmatprep.subr.bf16.mxu1 %v2015_v4  ;;  %v385_v33 = vld [vmem:[%s2776_s8 + $0x238] sm:$0xff]  ;;  %v1779_v36 = vpack.c.bf16 %v383_v31, %v379_v30  ;;  %v382_v38 = vld [vmem:[%s2776_s8 + $0x220] sm:$0xff]  ;;  %v380_v39 = vld [vmem:[%s2776_s8 + $0x210] sm:$0xff] }
  0xac   : > { %v2027_v40 = vpack.c.bf16 %v385_v33, %v381_v32  ;;  %v384_v41 = vld [vmem:[%s2776_s8 + $0x230] sm:$0xff]  ;;  %v387_v42 = vld [vmem:[%s2776_s8 + $0x248] sm:$0xff]  ;;  %v389_v44 = vld [vmem:[%s2776_s8 + $0x258] sm:$0xff]  ;;  %v1781_v46 = vpack.c.bf16 %v382_v38, %v378_v37 }
  0xad   : > { %1770 = vmatpush1.bf16.msra.mxu0 %v1769_v10  ;;  %v391_v43 = vld [vmem:[%s2776_s8 + $0x268] sm:$0xff]  ;;  %v393_v45 = vld [vmem:[%s2776_s8 + $0x278] sm:$0xff]  ;;  %v2029_v47 = vpack.c.bf16 %v384_v41, %v380_v39  ;;  %v386_v49 = vld [vmem:[%s2776_s8 + $0x240] sm:$0xff] }
  0xae   : > { %2018 = vmatpush1.bf16.msra.mxu1 %v2017_v11  ;;  %1772 = vmatprep.subr.bf16.mxu0 %v1771_v12  ;;  %v1783_v48 = vpack.c.bf16 %v391_v43, %v387_v42  ;;  %v390_v50 = vld [vmem:[%s2776_s8 + $0x260] sm:$0xff]  ;;  %v388_v51 = vld [vmem:[%s2776_s8 + $0x250] sm:$0xff]  ;;  %v2031_v52 = vpack.c.bf16 %v393_v45, %v389_v44  ;;  %v395_v54 = vld [vmem:[%s2776_s8 + $0x288] sm:$0xff] }
  0xaf   : > { %2020 = vmatprep.subr.bf16.mxu1 %v2019_v16  ;;  %v392_v53 = vld [vmem:[%s2776_s8 + $0x270] sm:$0xff]  ;;  %v399_v55 = vld [vmem:[%s2776_s8 + $0x2a8] sm:$0xff]  ;;  %v397_v56 = vld [vmem:[%s2776_s8 + $0x298] sm:$0xff]  ;;  %v1785_v58 = vpack.c.bf16 %v390_v50, %v386_v49 }
  0xb0   : > { %v401_v57 = vld [vmem:[%s2776_s8 + $0x2b8] sm:$0xff]  ;;  %v2033_v59 = vpack.c.bf16 %v392_v53, %v388_v51  ;;  %v1787_v60 = vpack.c.bf16 %v399_v55, %v395_v54  ;;  %v394_v61 = vld [vmem:[%s2776_s8 + $0x280] sm:$0xff]  ;;  %v396_v63 = vld [vmem:[%s2776_s8 + $0x290] sm:$0xff] }
  0xb1   : > { %1774 = vmatpush1.bf16.msra.mxu0 %v1773_v22  ;;  %v398_v62 = vld [vmem:[%s2776_s8 + $0x2a0] sm:$0xff]  ;;  %v2035_v0 = vpack.c.bf16 %v401_v57, %v397_v56  ;;  %v400_v1 = vld [vmem:[%s2776_s8 + $0x2b0] sm:$0xff]  ;;  %v403_v2 = vld [vmem:[%s2776_s8 + $0x2c8] sm:$0xff] }
  0xb2   : > { %2022 = vmatpush1.bf16.msra.mxu1 %v2021_v23  ;;  %1776 = vmatprep.subr.bf16.mxu0 %v1775_v24  ;;  %v407_v3 = vld [vmem:[%s2776_s8 + $0x2e8] sm:$0xff]  ;;  %v405_v4 = vld [vmem:[%s2776_s8 + $0x2d8] sm:$0xff]  ;;  %v1789_v6 = vpack.c.bf16 %v398_v62, %v394_v61  ;;  %v402_v7 = vld [vmem:[%s2776_s8 + $0x2c0] sm:$0xff]  ;;  %v2037_v8 = vpack.c.bf16 %v400_v1, %v396_v63 }
  0xb3   : > { %2024 = vmatprep.subr.bf16.mxu1 %v2023_v28  ;;  %v409_v5 = vld [vmem:[%s2776_s8 + $0x2f8] sm:$0xff]  ;;  %v1791_v9 = vpack.c.bf16 %v407_v3, %v403_v2  ;;  %v406_v10 = vld [vmem:[%s2776_s8 + $0x2e0] sm:$0xff]  ;;  %v404_v11 = vld [vmem:[%s2776_s8 + $0x2d0] sm:$0xff] }
  0xb4   : > { %v408_v12 = vld [vmem:[%s2776_s8 + $0x2f0] sm:$0xff]  ;;  %v2039_v13 = vpack.c.bf16 %v409_v5, %v405_v4  ;;  %v411_v14 = vld [vmem:[%s2776_s8 + $0x308] sm:$0xff]  ;;  %v413_v17 = vld [vmem:[%s2776_s8 + $0x318] sm:$0xff]  ;;  %v1793_v19 = vpack.c.bf16 %v406_v10, %v402_v7 }
  0xb5   : > { %1778 = vmatpush1.bf16.msra.mxu0 %v1777_v34  ;;  %v415_v15 = vld [vmem:[%s2776_s8 + $0x328] sm:$0xff]  ;;  %v417_v18 = vld [vmem:[%s2776_s8 + $0x338] sm:$0xff]  ;;  %v2041_v20 = vpack.c.bf16 %v408_v12, %v404_v11  ;;  %v410_v22 = vld [vmem:[%s2776_s8 + $0x300] sm:$0xff] }
  0xb6   : > { %2026 = vmatpush1.bf16.msra.mxu1 %v2025_v35  ;;  %1780 = vmatprep.subr.bf16.mxu0 %v1779_v36  ;;  %v307_v16 = vld [vmem:[#allocation2 + $0x8] sm:$0xff]  ;;  %v1795_v21 = vpack.c.bf16 %v415_v15, %v411_v14  ;;  %v414_v23 = vld [vmem:[%s2776_s8 + $0x320] sm:$0xff]  ;;  %v412_v24 = vld [vmem:[%s2776_s8 + $0x310] sm:$0xff]  ;;  %v2043_v25 = vpack.c.bf16 %v417_v18, %v413_v17 }
  0xb7   : > { %2028 = vmatprep.subr.bf16.mxu1 %v2027_v40  ;;  %882 = vmatprep.mubr.f32.mxu0 %v307_v16  ;;  %v416_v26 = vld [vmem:[%s2776_s8 + $0x330] sm:$0xff]  ;;  %v419_v27 = vld [vmem:[%s2776_s8 + $0x348] sm:$0xff]  ;;  %v421_v29 = vld [vmem:[%s2776_s8 + $0x358] sm:$0xff]  ;;  %v1797_v31 = vpack.c.bf16 %v414_v23, %v410_v22 }
  0xb8   : > { %1166 = vmatprep.mubr.f32.mxu1 %v307_v16  ;;  %v423_v28 = vld [vmem:[%s2776_s8 + $0x368] sm:$0xff]  ;;  %v425_v30 = vld [vmem:[%s2776_s8 + $0x378] sm:$0xff]  ;;  %v2045_v32 = vpack.c.bf16 %v416_v26, %v412_v24  ;;  %v418_v34 = vld [vmem:[%s2776_s8 + $0x340] sm:$0xff] }
  0xb9   : > { %1782 = vmatpush1.bf16.msra.mxu0 %v1781_v46  ;;  %v1799_v33 = vpack.c.bf16 %v423_v28, %v419_v27  ;;  %v422_v35 = vld [vmem:[%s2776_s8 + $0x360] sm:$0xff]  ;;  %v420_v36 = vld [vmem:[%s2776_s8 + $0x350] sm:$0xff]  ;;  %v2047_v37 = vpack.c.bf16 %v425_v30, %v421_v29  ;;  %v427_v39 = vld [vmem:[%s2776_s8 + $0x388] sm:$0xff] }
  0xba   : > { %2030 = vmatpush1.bf16.msra.mxu1 %v2029_v47  ;;  %1784 = vmatprep.subr.bf16.mxu0 %v1783_v48  ;;  %v424_v38 = vld [vmem:[%s2776_s8 + $0x370] sm:$0xff]  ;;  %v431_v40 = vld [vmem:[%s2776_s8 + $0x3a8] sm:$0xff]  ;;  %v429_v41 = vld [vmem:[%s2776_s8 + $0x398] sm:$0xff]  ;;  %v1801_v43 = vpack.c.bf16 %v422_v35, %v418_v34 }
  0xbb   : > { %2032 = vmatprep.subr.bf16.mxu1 %v2031_v52  ;;  %v433_v42 = vld [vmem:[%s2776_s8 + $0x3b8] sm:$0xff]  ;;  %v2049_v44 = vpack.c.bf16 %v424_v38, %v420_v36  ;;  %v1803_v45 = vpack.c.bf16 %v431_v40, %v427_v39  ;;  %v426_v46 = vld [vmem:[%s2776_s8 + $0x380] sm:$0xff]  ;;  %v428_v48 = vld [vmem:[%s2776_s8 + $0x390] sm:$0xff] }
  0xbc   : > { %v430_v47 = vld [vmem:[%s2776_s8 + $0x3a0] sm:$0xff]  ;;  %v2051_v49 = vpack.c.bf16 %v433_v42, %v429_v41  ;;  %v432_v50 = vld [vmem:[%s2776_s8 + $0x3b0] sm:$0xff]  ;;  %v435_v51 = vld [vmem:[%s2776_s8 + $0x3c8] sm:$0xff] }
  0xbd   : > { %1786 = vmatpush1.bf16.msra.mxu0 %v1785_v58  ;;  %v439_v52 = vld [vmem:[%s2776_s8 + $0x3e8] sm:$0xff]  ;;  %v437_v53 = vld [vmem:[%s2776_s8 + $0x3d8] sm:$0xff]  ;;  %v1805_v55 = vpack.c.bf16 %v430_v47, %v426_v46  ;;  %v2053_v56 = vpack.c.bf16 %v432_v50, %v428_v48  ;;  %v434_v58 = vld [vmem:[%s2776_s8 + $0x3c0] sm:$0xff] }
  0xbe   : > { %2034 = vmatpush1.bf16.msra.mxu1 %v2033_v59  ;;  %1788 = vmatprep.subr.bf16.mxu0 %v1787_v60  ;;  %v441_v54 = vld [vmem:[%s2776_s8 + $0x3f8] sm:$0xff]  ;;  %v1807_v57 = vpack.c.bf16 %v439_v52, %v435_v51  ;;  %v438_v59 = vld [vmem:[%s2776_s8 + $0x3e0] sm:$0xff]  ;;  %v436_v60 = vld [vmem:[%s2776_s8 + $0x3d0] sm:$0xff] }
  0xbf   : > { %2036 = vmatprep.subr.bf16.mxu1 %v2035_v0  ;;  %v2055_v61 = vpack.c.bf16 %v441_v54, %v437_v53  ;;  %v440_v62 = vld [vmem:[%s2776_s8 + $0x3f0] sm:$0xff]  ;;  %v443_v63 = vld [vmem:[%s2776_s8 + $0x408] sm:$0xff]  ;;  %v445_v1 = vld [vmem:[%s2776_s8 + $0x418] sm:$0xff]  ;;  %v1809_v3 = vpack.c.bf16 %v438_v59, %v434_v58 }
  0xc0   : > { %v447_v0 = vld [vmem:[%s2776_s8 + $0x428] sm:$0xff]  ;;  %v449_v2 = vld [vmem:[%s2776_s8 + $0x438] sm:$0xff]  ;;  %v2057_v4 = vpack.c.bf16 %v440_v62, %v436_v60  ;;  %v446_v7 = vld [vmem:[%s2776_s8 + $0x420] sm:$0xff] }
  0xc1   : > { %1790 = vmatpush1.bf16.msra.mxu0 %v1789_v6  ;;  %v1811_v5 = vpack.c.bf16 %v447_v0, %v443_v63  ;;  %v442_v6 = vld [vmem:[%s2776_s8 + $0x400] sm:$0xff]  ;;  %v448_v10 = vld [vmem:[%s2776_s8 + $0x430] sm:$0xff]  ;;  %v451_v11 = vld [vmem:[%s2776_s8 + $0x448] sm:$0xff] }
  0xc2   : > { %2038 = vmatpush1.bf16.msra.mxu1 %v2037_v8  ;;  %1792 = vmatprep.subr.bf16.mxu0 %v1791_v9  ;;  %v444_v8 = vld [vmem:[%s2776_s8 + $0x410] sm:$0xff]  ;;  %v2059_v9 = vpack.c.bf16 %v449_v2, %v445_v1  ;;  %v455_v12 = vld [vmem:[%s2776_s8 + $0x468] sm:$0xff]  ;;  %v457_v14 = vld [vmem:[%s2776_s8 + $0x478] sm:$0xff]  ;;  %v1813_v16 = vpack.c.bf16 %v446_v7, %v442_v6 }
  0xc3   : > { %2040 = vmatprep.subr.bf16.mxu1 %v2039_v13  ;;  %v453_v13 = vld [vmem:[%s2776_s8 + $0x458] sm:$0xff]  ;;  %v306_v15 = vld [vmem:[#allocation2] sm:$0xff]  ;;  %v2061_v17 = vpack.c.bf16 %v448_v10, %v444_v8  ;;  %v1815_v18 = vpack.c.bf16 %v455_v12, %v451_v11  ;;  %v456_v23 = vld [vmem:[%s2776_s8 + $0x470] sm:$0xff] }
  0xc4   : > { %v2063_v22 = vpack.c.bf16 %v457_v14, %v453_v13  ;;  %v459_v24 = vld [vmem:[%s2776_s8 + $0x488] sm:$0xff]  ;;  %v461_v26 = vld [vmem:[%s2776_s8 + $0x498] sm:$0xff]  ;;  %v464_v35 = vld [vmem:[%s2776_s8 + $0x4b0] sm:$0xff] }
  0xc5   : > { %1794 = vmatpush1.bf16.msra.mxu0 %v1793_v19  ;;  %v450_v19 = vld [vmem:[%s2776_s8 + $0x440] sm:$0xff]  ;;  %v465_v27 = vld [vmem:[%s2776_s8 + $0x4b8] sm:$0xff]  ;;  %v467_v36 = vld [vmem:[%s2776_s8 + $0x4c8] sm:$0xff] }
  0xc6   : > { %2042 = vmatpush1.bf16.msra.mxu1 %v2041_v20  ;;  %1796 = vmatprep.subr.bf16.mxu0 %v1795_v21  ;;  %v454_v20 = vld [vmem:[%s2776_s8 + $0x460] sm:$0xff]  ;;  %v452_v21 = vld [vmem:[%s2776_s8 + $0x450] sm:$0xff]  ;;  %v2067_v34 = vpack.c.bf16 %v465_v27, %v461_v26  ;;  %v469_v38 = vld [vmem:[%s2776_s8 + $0x4d8] sm:$0xff] }
  0xc7   : > { %2044 = vmatprep.subr.bf16.mxu1 %v2043_v25  ;;  %v463_v25 = vld [vmem:[%s2776_s8 + $0x4a8] sm:$0xff]  ;;  %v1817_v28 = vpack.c.bf16 %v454_v20, %v450_v19  ;;  %v2065_v29 = vpack.c.bf16 %v456_v23, %v452_v21  ;;  %v473_v39 = vld [vmem:[%s2776_s8 + $0x4f8] sm:$0xff]  ;;  %v472_v47 = vld [vmem:[%s2776_s8 + $0x4f0] sm:$0xff] }
  0xc8   : > { %v1819_v30 = vpack.c.bf16 %v463_v25, %v459_v24  ;;  %v2071_v46 = vpack.c.bf16 %v473_v39, %v469_v38  ;;  %v475_v48 = vld [vmem:[%s2776_s8 + $0x508] sm:$0xff]  ;;  %v477_v50 = vld [vmem:[%s2776_s8 + $0x518] sm:$0xff]  ;;  %v480_v59 = vld [vmem:[%s2776_s8 + $0x530] sm:$0xff] }
  0xc9   : > { %1798 = vmatpush1.bf16.msra.mxu0 %v1797_v31  ;;  %v458_v31 = vld [vmem:[%s2776_s8 + $0x480] sm:$0xff]  ;;  %v481_v51 = vld [vmem:[%s2776_s8 + $0x538] sm:$0xff]  ;;  %v483_v60 = vld [vmem:[%s2776_s8 + $0x548] sm:$0xff] }
  0xca   : > { %2046 = vmatpush1.bf16.msra.mxu1 %v2045_v32  ;;  %1800 = vmatprep.subr.bf16.mxu0 %v1799_v33  ;;  %v462_v32 = vld [vmem:[%s2776_s8 + $0x4a0] sm:$0xff]  ;;  %v460_v33 = vld [vmem:[%s2776_s8 + $0x490] sm:$0xff]  ;;  %v2075_v58 = vpack.c.bf16 %v481_v51, %v477_v50  ;;  %v485_v62 = vld [vmem:[%s2776_s8 + $0x558] sm:$0xff] }
  0xcb   : > { %2048 = vmatprep.subr.bf16.mxu1 %v2047_v37  ;;  %v471_v37 = vld [vmem:[%s2776_s8 + $0x4e8] sm:$0xff]  ;;  %v1821_v40 = vpack.c.bf16 %v462_v32, %v458_v31  ;;  %v2069_v41 = vpack.c.bf16 %v464_v35, %v460_v33  ;;  %v489_v63 = vld [vmem:[%s2776_s8 + $0x578] sm:$0xff]  ;;  %v488_v7 = vld [vmem:[%s2776_s8 + $0x570] sm:$0xff] }
  0xcc   : > { %v1823_v42 = vpack.c.bf16 %v471_v37, %v467_v36  ;;  %v2079_v6 = vpack.c.bf16 %v489_v63, %v485_v62  ;;  %v491_v8 = vld [vmem:[%s2776_s8 + $0x588] sm:$0xff]  ;;  %v493_v10 = vld [vmem:[%s2776_s8 + $0x598] sm:$0xff]  ;;  %v490_v13 = vld [vmem:[%s2776_s8 + $0x580] sm:$0xff] }
  0xcd   : > { %1802 = vmatpush1.bf16.msra.mxu0 %v1801_v43  ;;  %v466_v43 = vld [vmem:[%s2776_s8 + $0x4c0] sm:$0xff]  ;;  %v497_v11 = vld [vmem:[%s2776_s8 + $0x5b8] sm:$0xff]  ;;  %v499_v20 = vld [vmem:[%s2776_s8 + $0x5c8] sm:$0xff] }
  0xce   : > { %2050 = vmatpush1.bf16.msra.mxu1 %v2049_v44  ;;  %1804 = vmatprep.subr.bf16.mxu0 %v1803_v45  ;;  %v470_v44 = vld [vmem:[%s2776_s8 + $0x4e0] sm:$0xff]  ;;  %v468_v45 = vld [vmem:[%s2776_s8 + $0x4d0] sm:$0xff]  ;;  %v2083_v19 = vpack.c.bf16 %v497_v11, %v493_v10  ;;  %v503_v21 = vld [vmem:[%s2776_s8 + $0x5e8] sm:$0xff] }
  0xcf   : > { %2052 = vmatprep.subr.bf16.mxu1 %v2051_v49  ;;  %v479_v49 = vld [vmem:[%s2776_s8 + $0x528] sm:$0xff]  ;;  %v1825_v52 = vpack.c.bf16 %v470_v44, %v466_v43  ;;  %v2073_v53 = vpack.c.bf16 %v472_v47, %v468_v45  ;;  %v501_v23 = vld [vmem:[%s2776_s8 + $0x5d8] sm:$0xff]  ;;  %v1839_v27 = vpack.c.bf16 %v503_v21, %v499_v20  ;;  %v504_v32 = vld [vmem:[%s2776_s8 + $0x5f0] sm:$0xff] }
  0xd0   : > { %v1827_v54 = vpack.c.bf16 %v479_v49, %v475_v48  ;;  %v505_v24 = vld [vmem:[%s2776_s8 + $0x5f8] sm:$0xff]  ;;  %v507_v33 = vld [vmem:[%s2776_s8 + $0x608] sm:$0xff]  ;;  %v512_v44 = vld [vmem:[%s2776_s8 + $0x630] sm:$0xff] }
  0xd1   : > { %1806 = vmatpush1.bf16.msra.mxu0 %v1805_v55  ;;  %v474_v55 = vld [vmem:[%s2776_s8 + $0x500] sm:$0xff]  ;;  %v2087_v31 = vpack.c.bf16 %v505_v24, %v501_v23  ;;  %v509_v35 = vld [vmem:[%s2776_s8 + $0x618] sm:$0xff]  ;;  %v515_v45 = vld [vmem:[%s2776_s8 + $0x648] sm:$0xff] }
  0xd2   : > { %2054 = vmatpush1.bf16.msra.mxu1 %v2053_v56  ;;  %1808 = vmatprep.subr.bf16.mxu0 %v1807_v57  ;;  %v478_v56 = vld [vmem:[%s2776_s8 + $0x520] sm:$0xff]  ;;  %v476_v57 = vld [vmem:[%s2776_s8 + $0x510] sm:$0xff]  ;;  %v513_v36 = vld [vmem:[%s2776_s8 + $0x638] sm:$0xff] }
  0xd3   : > { %2056 = vmatprep.subr.bf16.mxu1 %v2055_v61  ;;  %v487_v61 = vld [vmem:[%s2776_s8 + $0x568] sm:$0xff]  ;;  %v1829_v0 = vpack.c.bf16 %v478_v56, %v474_v55  ;;  %v2077_v1 = vpack.c.bf16 %v480_v59, %v476_v57  ;;  %v2091_v43 = vpack.c.bf16 %v513_v36, %v509_v35  ;;  %v517_v47 = vld [vmem:[%s2776_s8 + $0x658] sm:$0xff]  ;;  %v520_v56 = vld [vmem:[%s2776_s8 + $0x670] sm:$0xff] }
  0xd4   : > { %v1831_v2 = vpack.c.bf16 %v487_v61, %v483_v60  ;;  %v521_v48 = vld [vmem:[%s2776_s8 + $0x678] sm:$0xff]  ;;  %v523_v57 = vld [vmem:[%s2776_s8 + $0x688] sm:$0xff]  ;;  %v538_v24 = vld [vmem:[%s2776_s8 + $0x700] sm:$0xff] }
  0xd5   : > { %1810 = vmatpush1.bf16.msra.mxu0 %v1809_v3  ;;  %v482_v3 = vld [vmem:[%s2776_s8 + $0x540] sm:$0xff]  ;;  %v2095_v55 = vpack.c.bf16 %v521_v48, %v517_v47  ;;  %v525_v59 = vld [vmem:[%s2776_s8 + $0x698] sm:$0xff] }
  0xd6   : > { %2058 = vmatpush1.bf16.msra.mxu1 %v2057_v4  ;;  %1812 = vmatprep.subr.bf16.mxu0 %v1811_v5  ;;  %v486_v4 = vld [vmem:[%s2776_s8 + $0x560] sm:$0xff]  ;;  %v484_v5 = vld [vmem:[%s2776_s8 + $0x550] sm:$0xff]  ;;  %v529_v60 = vld [vmem:[%s2776_s8 + $0x6b8] sm:$0xff] }
  0xd7   : > { %2060 = vmatprep.subr.bf16.mxu1 %v2059_v9  ;;  %v495_v9 = vld [vmem:[%s2776_s8 + $0x5a8] sm:$0xff]  ;;  %v1833_v12 = vpack.c.bf16 %v486_v4, %v482_v3  ;;  %v2081_v14 = vpack.c.bf16 %v488_v7, %v484_v5  ;;  %v2099_v3 = vpack.c.bf16 %v529_v60, %v525_v59  ;;  %v528_v4 = vld [vmem:[%s2776_s8 + $0x6b0] sm:$0xff]  ;;  %v533_v7 = vld [vmem:[%s2776_s8 + $0x6d8] sm:$0xff] }
  0xd8   : > { %883 = vmatmul.mubr.f32.vlgmr.msra.gmra.mrb[0].mxu0 %v306_v15  ;;  %v531_v5 = vld [vmem:[%s2776_s8 + $0x6c8] sm:$0xff]  ;;  %v545_v20 = vld [vmem:[%s2776_s8 + $0x738] sm:$0xff]  ;;  %v546_v36 = vld [vmem:[%s2776_s8 + $0x740] sm:$0xff] }
  0xd9   : > { %1814 = vmatpush1.bf16.msra.mxu0 %v1813_v16  ;;  %1167 = vmatmul.mubr.f32.vlgmr.msra.gmra.mrb[0].mxu1 %v306_v15  ;;  %v1835_v15 = vpack.c.bf16 %v495_v9, %v491_v8  ;;  %v494_v16 = vld [vmem:[%s2776_s8 + $0x5a0] sm:$0xff]  ;;  %v537_v8 = vld [vmem:[%s2776_s8 + $0x6f8] sm:$0xff] }
  0xda   : > { %2062 = vmatpush1.bf16.msra.mxu1 %v2061_v17  ;;  %1816 = vmatprep.subr.bf16.mxu0 %v1815_v18  ;;  %v492_v17 = vld [vmem:[%s2776_s8 + $0x590] sm:$0xff]  ;;  %v1837_v25 = vpack.c.bf16 %v494_v16, %v490_v13  ;;  %v534_v13 = vld [vmem:[%s2776_s8 + $0x6e0] sm:$0xff] }
  0xdb   : > { %2064 = vmatprep.subr.bf16.mxu1 %v2063_v22  ;;  %v496_v18 = vld [vmem:[%s2776_s8 + $0x5b0] sm:$0xff]  ;;  %v309_v22 = vld [vmem:[#allocation2 + $0x18] sm:$0xff]  ;;  %v554_v48 = vld [vmem:[%s2776_s8 + $0x780] sm:$0xff] }
  0xdc   : > { %953 = vmatprep.mubr.f32.mxu0 %v309_v22  ;;  %1237 = vmatprep.mubr.f32.mxu1 %v309_v22  ;;  %v2085_v26 = vpack.c.bf16 %v496_v18, %v492_v17  ;;  %v536_v16 = vld [vmem:[%s2776_s8 + $0x6f0] sm:$0xff]  ;;  %v539_v17 = vld [vmem:[%s2776_s8 + $0x708] sm:$0xff]  ;;  %v562_v60 = vld [vmem:[%s2776_s8 + $0x7c0] sm:$0xff] }
  0xdd   : > { %1818 = vmatpush1.bf16.msra.mxu0 %v1817_v28  ;;  %v498_v28 = vld [vmem:[%s2776_s8 + $0x5c0] sm:$0xff]  ;;  %v543_v18 = vld [vmem:[%s2776_s8 + $0x728] sm:$0xff] }
  0xde   : > { %2066 = vmatpush1.bf16.msra.mxu1 %v2065_v29  ;;  %1820 = vmatprep.subr.bf16.mxu0 %v1819_v30  ;;  %v502_v29 = vld [vmem:[%s2776_s8 + $0x5e0] sm:$0xff]  ;;  %v500_v30 = vld [vmem:[%s2776_s8 + $0x5d0] sm:$0xff]  ;;  %v1859_v23 = vpack.c.bf16 %v543_v18, %v539_v17 }
  0xdf   : > { %2068 = vmatprep.subr.bf16.mxu1 %v2067_v34  ;;  %v511_v34 = vld [vmem:[%s2776_s8 + $0x628] sm:$0xff]  ;;  %v1841_v37 = vpack.c.bf16 %v502_v29, %v498_v28  ;;  %v2089_v38 = vpack.c.bf16 %v504_v32, %v500_v30  ;;  %v544_v28 = vld [vmem:[%s2776_s8 + $0x730] sm:$0xff]  ;;  %v553_v32 = vld [vmem:[%s2776_s8 + $0x778] sm:$0xff] }
  0xe0   : > { %v1843_v39 = vpack.c.bf16 %v511_v34, %v507_v33  ;;  %v547_v29 = vld [vmem:[%s2776_s8 + $0x748] sm:$0xff]  ;;  %v308_v17 = vld [vmem:[#allocation2 + $0x10] sm:$0xff] }
  0xe1   : > { %1822 = vmatpush1.bf16.msra.mxu0 %v1821_v40  ;;  %v506_v40 = vld [vmem:[%s2776_s8 + $0x600] sm:$0xff]  ;;  %v551_v30 = vld [vmem:[%s2776_s8 + $0x768] sm:$0xff] }
  0xe2   : > { %2070 = vmatpush1.bf16.msra.mxu1 %v2069_v41  ;;  %1824 = vmatprep.subr.bf16.mxu0 %v1823_v42  ;;  %v510_v41 = vld [vmem:[%s2776_s8 + $0x620] sm:$0xff]  ;;  %v508_v42 = vld [vmem:[%s2776_s8 + $0x610] sm:$0xff]  ;;  %v1863_v35 = vpack.c.bf16 %v551_v30, %v547_v29  ;;  %v593_v29 = vld [vmem:[%s2776_s8 + $0x8b8] sm:$0xff] }
  0xe3   : > { %2072 = vmatprep.subr.bf16.mxu1 %v2071_v46  ;;  %v519_v46 = vld [vmem:[%s2776_s8 + $0x668] sm:$0xff]  ;;  %v1845_v49 = vpack.c.bf16 %v510_v41, %v506_v40  ;;  %v2093_v50 = vpack.c.bf16 %v512_v44, %v508_v42  ;;  %v552_v40 = vld [vmem:[%s2776_s8 + $0x770] sm:$0xff]  ;;  %v561_v44 = vld [vmem:[%s2776_s8 + $0x7b8] sm:$0xff] }
  0xe4   : > { %v1847_v51 = vpack.c.bf16 %v519_v46, %v515_v45  ;;  %v555_v41 = vld [vmem:[%s2776_s8 + $0x788] sm:$0xff] }
  0xe5   : > { %1826 = vmatpush1.bf16.msra.mxu0 %v1825_v52  ;;  %v514_v52 = vld [vmem:[%s2776_s8 + $0x640] sm:$0xff]  ;;  %v559_v42 = vld [vmem:[%s2776_s8 + $0x7a8] sm:$0xff] }
  0xe6   : > { %2074 = vmatpush1.bf16.msra.mxu1 %v2073_v53  ;;  %1828 = vmatprep.subr.bf16.mxu0 %v1827_v54  ;;  %v518_v53 = vld [vmem:[%s2776_s8 + $0x660] sm:$0xff]  ;;  %v516_v54 = vld [vmem:[%s2776_s8 + $0x650] sm:$0xff]  ;;  %v1867_v47 = vpack.c.bf16 %v559_v42, %v555_v41  ;;  %v311_v30 = vld [vmem:[#allocation2 + $0x28] sm:$0xff] }
  0xe7   : > { %2076 = vmatprep.subr.bf16.mxu1 %v2075_v58  ;;  %v527_v58 = vld [vmem:[%s2776_s8 + $0x6a8] sm:$0xff]  ;;  %v1849_v61 = vpack.c.bf16 %v518_v53, %v514_v52  ;;  %v2097_v62 = vpack.c.bf16 %v520_v56, %v516_v54  ;;  %v560_v52 = vld [vmem:[%s2776_s8 + $0x7b0] sm:$0xff]  ;;  %v569_v56 = vld [vmem:[%s2776_s8 + $0x7f8] sm:$0xff] }
  0xe8   : > { %v1851_v63 = vpack.c.bf16 %v527_v58, %v523_v57  ;;  %v563_v53 = vld [vmem:[%s2776_s8 + $0x7c8] sm:$0xff]  ;;  %v597_v41 = vld [vmem:[%s2776_s8 + $0x8d8] sm:$0xff] }
  0xe9   : > { %1830 = vmatpush1.bf16.msra.mxu0 %v1829_v0  ;;  %v522_v0 = vld [vmem:[%s2776_s8 + $0x680] sm:$0xff]  ;;  %v567_v54 = vld [vmem:[%s2776_s8 + $0x7e8] sm:$0xff]  ;;  %v601_v42 = vld [vmem:[%s2776_s8 + $0x8f8] sm:$0xff] }
  0xea   : > { %2078 = vmatpush1.bf16.msra.mxu1 %v2077_v1  ;;  %1832 = vmatprep.subr.bf16.mxu0 %v1831_v2  ;;  %v526_v1 = vld [vmem:[%s2776_s8 + $0x6a0] sm:$0xff]  ;;  %v524_v2 = vld [vmem:[%s2776_s8 + $0x690] sm:$0xff]  ;;  %v1871_v59 = vpack.c.bf16 %v567_v54, %v563_v53  ;;  %v605_v53 = vld [vmem:[%s2776_s8 + $0x918] sm:$0xff] }
  0xeb   : > { %2080 = vmatprep.subr.bf16.mxu1 %v2079_v6  ;;  %v535_v6 = vld [vmem:[%s2776_s8 + $0x6e8] sm:$0xff]  ;;  %v1853_v9 = vpack.c.bf16 %v526_v1, %v522_v0  ;;  %v2101_v10 = vpack.c.bf16 %v528_v4, %v524_v2  ;;  %v568_v0 = vld [vmem:[%s2776_s8 + $0x7f0] sm:$0xff]  ;;  %v577_v4 = vld [vmem:[%s2776_s8 + $0x838] sm:$0xff] }
  0xec   : > { %v1855_v11 = vpack.c.bf16 %v535_v6, %v531_v5  ;;  %v571_v1 = vld [vmem:[%s2776_s8 + $0x808] sm:$0xff]  ;;  %v609_v54 = vld [vmem:[%s2776_s8 + $0x938] sm:$0xff] }
  0xed   : > { %1834 = vmatpush1.bf16.msra.mxu0 %v1833_v12  ;;  %v530_v12 = vld [vmem:[%s2776_s8 + $0x6c0] sm:$0xff]  ;;  %v575_v2 = vld [vmem:[%s2776_s8 + $0x828] sm:$0xff] }
  0xee   : > { %2082 = vmatpush1.bf16.msra.mxu1 %v2081_v14  ;;  %1836 = vmatprep.subr.bf16.mxu0 %v1835_v15  ;;  %v532_v14 = vld [vmem:[%s2776_s8 + $0x6d0] sm:$0xff]  ;;  %v2103_v15 = vpack.c.bf16 %v537_v8, %v533_v7  ;;  %v1857_v21 = vpack.c.bf16 %v534_v13, %v530_v12  ;;  %v1875_v7 = vpack.c.bf16 %v575_v2, %v571_v1  ;;  %v570_v8 = vld [vmem:[%s2776_s8 + $0x800] sm:$0xff]  ;;  %v579_v13 = vld [vmem:[%s2776_s8 + $0x848] sm:$0xff] }
  0xef   : > { %2084 = vmatprep.subr.bf16.mxu1 %v2083_v19  ;;  %v541_v19 = vld [vmem:[%s2776_s8 + $0x718] sm:$0xff]  ;;  %v2105_v22 = vpack.c.bf16 %v536_v16, %v532_v14  ;;  %v576_v12 = vld [vmem:[%s2776_s8 + $0x830] sm:$0xff]  ;;  %v583_v14 = vld [vmem:[%s2776_s8 + $0x868] sm:$0xff] }
  0xf0   : > { %v585_v16 = vld [vmem:[%s2776_s8 + $0x878] sm:$0xff] }
  0xf1   : > { %1838 = vmatpush1.bf16.msra.mxu0 %v1837_v25  ;;  %v542_v25 = vld [vmem:[%s2776_s8 + $0x720] sm:$0xff]  ;;  %v613_v1 = vld [vmem:[%s2776_s8 + $0x958] sm:$0xff] }
  0xf2   : > { %2086 = vmatpush1.bf16.msra.mxu1 %v2085_v26  ;;  %1840 = vmatprep.subr.bf16.mxu0 %v1839_v27  ;;  %v540_v26 = vld [vmem:[%s2776_s8 + $0x710] sm:$0xff]  ;;  %v2107_v27 = vpack.c.bf16 %v545_v20, %v541_v19  ;;  %v1861_v33 = vpack.c.bf16 %v542_v25, %v538_v24  ;;  %v1879_v20 = vpack.c.bf16 %v583_v14, %v579_v13  ;;  %v617_v2 = vld [vmem:[%s2776_s8 + $0x978] sm:$0xff] }
  0xf3   : > { %2088 = vmatprep.subr.bf16.mxu1 %v2087_v31  ;;  %v549_v31 = vld [vmem:[%s2776_s8 + $0x758] sm:$0xff]  ;;  %v2109_v34 = vpack.c.bf16 %v544_v28, %v540_v26  ;;  %v584_v25 = vld [vmem:[%s2776_s8 + $0x870] sm:$0xff]  ;;  %v587_v26 = vld [vmem:[%s2776_s8 + $0x888] sm:$0xff] }
  0xf4   : > { %v589_v28 = vld [vmem:[%s2776_s8 + $0x898] sm:$0xff] }
  0xf5   : > { %1842 = vmatpush1.bf16.msra.mxu0 %v1841_v37  ;;  %v550_v37 = vld [vmem:[%s2776_s8 + $0x760] sm:$0xff]  ;;  %v621_v13 = vld [vmem:[%s2776_s8 + $0x998] sm:$0xff] }
  0xf6   : > { %2090 = vmatpush1.bf16.msra.mxu1 %v2089_v38  ;;  %1844 = vmatprep.subr.bf16.mxu0 %v1843_v39  ;;  %v548_v38 = vld [vmem:[%s2776_s8 + $0x750] sm:$0xff]  ;;  %v2111_v39 = vpack.c.bf16 %v553_v32, %v549_v31  ;;  %v1865_v45 = vpack.c.bf16 %v550_v37, %v546_v36  ;;  %v2131_v37 = vpack.c.bf16 %v593_v29, %v589_v28  ;;  %v625_v14 = vld [vmem:[%s2776_s8 + $0x9b8] sm:$0xff] }
  0xf7   : > { %2092 = vmatprep.subr.bf16.mxu1 %v2091_v43  ;;  %v557_v43 = vld [vmem:[%s2776_s8 + $0x798] sm:$0xff]  ;;  %v2113_v46 = vpack.c.bf16 %v552_v40, %v548_v38  ;;  %v588_v36 = vld [vmem:[%s2776_s8 + $0x890] sm:$0xff]  ;;  %v599_v40 = vld [vmem:[%s2776_s8 + $0x8e8] sm:$0xff] }
  0xf8   : > { %v592_v38 = vld [vmem:[%s2776_s8 + $0x8b0] sm:$0xff] }
  0xf9   : > { %1846 = vmatpush1.bf16.msra.mxu0 %v1845_v49  ;;  %v558_v49 = vld [vmem:[%s2776_s8 + $0x7a0] sm:$0xff] }
  0xfa   : > { %2094 = vmatpush1.bf16.msra.mxu1 %v2093_v50  ;;  %1848 = vmatprep.subr.bf16.mxu0 %v1847_v51  ;;  %v556_v50 = vld [vmem:[%s2776_s8 + $0x790] sm:$0xff]  ;;  %v2115_v51 = vpack.c.bf16 %v561_v44, %v557_v43  ;;  %v1869_v57 = vpack.c.bf16 %v558_v49, %v554_v48  ;;  %v2133_v44 = vpack.c.bf16 %v592_v38, %v588_v36  ;;  %v639_v36 = vld [vmem:[%s2776_s8 + $0xa28] sm:$0xff]  ;;  %v641_v38 = vld [vmem:[%s2776_s8 + $0xa38] sm:$0xff] }
  0xfb   : > { %2096 = vmatprep.subr.bf16.mxu1 %v2095_v55  ;;  %v565_v55 = vld [vmem:[%s2776_s8 + $0x7d8] sm:$0xff]  ;;  %v2117_v58 = vpack.c.bf16 %v560_v52, %v556_v50  ;;  %v596_v48 = vld [vmem:[%s2776_s8 + $0x8d0] sm:$0xff]  ;;  %v2135_v49 = vpack.c.bf16 %v601_v42, %v597_v41  ;;  %v607_v52 = vld [vmem:[%s2776_s8 + $0x928] sm:$0xff] }
  0xfc   : > { %v600_v50 = vld [vmem:[%s2776_s8 + $0x8f0] sm:$0xff]  ;;  %v634_v42 = vld [vmem:[%s2776_s8 + $0xa00] sm:$0xff] }
  0xfd   : > { %1850 = vmatpush1.bf16.msra.mxu0 %v1849_v61  ;;  %v566_v61 = vld [vmem:[%s2776_s8 + $0x7e0] sm:$0xff] }
  0xfe   : > { %2098 = vmatpush1.bf16.msra.mxu1 %v2097_v62  ;;  %1852 = vmatprep.subr.bf16.mxu0 %v1851_v63  ;;  %v564_v62 = vld [vmem:[%s2776_s8 + $0x7d0] sm:$0xff]  ;;  %v2119_v63 = vpack.c.bf16 %v569_v56, %v565_v55  ;;  %v1873_v5 = vpack.c.bf16 %v566_v61, %v562_v60  ;;  %v2137_v56 = vpack.c.bf16 %v600_v50, %v596_v48  ;;  %v647_v48 = vld [vmem:[%s2776_s8 + $0xa68] sm:$0xff]  ;;  %v649_v50 = vld [vmem:[%s2776_s8 + $0xa78] sm:$0xff] }
  0xff   : > { %2100 = vmatprep.subr.bf16.mxu1 %v2099_v3  ;;  %v573_v3 = vld [vmem:[%s2776_s8 + $0x818] sm:$0xff]  ;;  %v2121_v6 = vpack.c.bf16 %v568_v0, %v564_v62  ;;  %v604_v60 = vld [vmem:[%s2776_s8 + $0x910] sm:$0xff]  ;;  %v2139_v61 = vpack.c.bf16 %v609_v54, %v605_v53  ;;  %v615_v0 = vld [vmem:[%s2776_s8 + $0x968] sm:$0xff] }
 0x100   : > { %v608_v62 = vld [vmem:[%s2776_s8 + $0x930] sm:$0xff]  ;;  %v642_v54 = vld [vmem:[%s2776_s8 + $0xa40] sm:$0xff] }
 0x101   : > { %1854 = vmatpush1.bf16.msra.mxu0 %v1853_v9  ;;  %v574_v9 = vld [vmem:[%s2776_s8 + $0x820] sm:$0xff] }
 0x102   : > { %2102 = vmatpush1.bf16.msra.mxu1 %v2101_v10  ;;  %1856 = vmatprep.subr.bf16.mxu0 %v1855_v11  ;;  %v572_v10 = vld [vmem:[%s2776_s8 + $0x810] sm:$0xff]  ;;  %v2123_v11 = vpack.c.bf16 %v577_v4, %v573_v3  ;;  %v1877_v18 = vpack.c.bf16 %v574_v9, %v570_v8  ;;  %v2141_v4 = vpack.c.bf16 %v608_v62, %v604_v60  ;;  %v655_v60 = vld [vmem:[%s2776_s8 + $0xaa8] sm:$0xff]  ;;  %v657_v62 = vld [vmem:[%s2776_s8 + $0xab8] sm:$0xff] }
 0x103   : > { %2104 = vmatprep.subr.bf16.mxu1 %v2103_v15  ;;  %v581_v15 = vld [vmem:[%s2776_s8 + $0x858] sm:$0xff]  ;;  %v2125_v19 = vpack.c.bf16 %v576_v12, %v572_v10  ;;  %v612_v8 = vld [vmem:[%s2776_s8 + $0x950] sm:$0xff]  ;;  %v2143_v9 = vpack.c.bf16 %v617_v2, %v613_v1  ;;  %v623_v12 = vld [vmem:[%s2776_s8 + $0x9a8] sm:$0xff] }
 0x104   : > { %v2127_v24 = vpack.c.bf16 %v585_v16, %v581_v15  ;;  %v616_v10 = vld [vmem:[%s2776_s8 + $0x970] sm:$0xff]  ;;  %v650_v2 = vld [vmem:[%s2776_s8 + $0xa80] sm:$0xff] }
 0x105   : > { %1858 = vmatpush1.bf16.msra.mxu0 %v1857_v21  ;;  %v578_v21 = vld [vmem:[%s2776_s8 + $0x840] sm:$0xff]  ;;  %v2145_v16 = vpack.c.bf16 %v616_v10, %v612_v8  ;;  %v663_v8 = vld [vmem:[%s2776_s8 + $0xae8] sm:$0xff]  ;;  %v665_v10 = vld [vmem:[%s2776_s8 + $0xaf8] sm:$0xff] }
 0x106   : > { %2106 = vmatpush1.bf16.msra.mxu1 %v2105_v22  ;;  %1860 = vmatprep.subr.bf16.mxu0 %v1859_v23  ;;  %v582_v22 = vld [vmem:[%s2776_s8 + $0x860] sm:$0xff]  ;;  %v580_v23 = vld [vmem:[%s2776_s8 + $0x850] sm:$0xff] }
 0x107   : > { %2108 = vmatprep.subr.bf16.mxu1 %v2107_v27  ;;  %v591_v27 = vld [vmem:[%s2776_s8 + $0x8a8] sm:$0xff]  ;;  %v1881_v31 = vpack.c.bf16 %v582_v22, %v578_v21  ;;  %v2129_v32 = vpack.c.bf16 %v584_v25, %v580_v23  ;;  %v2147_v21 = vpack.c.bf16 %v625_v14, %v621_v13  ;;  %v624_v22 = vld [vmem:[%s2776_s8 + $0x9b0] sm:$0xff]  ;;  %v629_v25 = vld [vmem:[%s2776_s8 + $0x9d8] sm:$0xff] }
 0x108   : > { %v627_v23 = vld [vmem:[%s2776_s8 + $0x9c8] sm:$0xff]  ;;  %v658_v14 = vld [vmem:[%s2776_s8 + $0xac0] sm:$0xff] }
 0x109   : > { %1862 = vmatpush1.bf16.msra.mxu0 %v1861_v33  ;;  %v1883_v33 = vpack.c.bf16 %v591_v27, %v587_v26  ;;  %v633_v26 = vld [vmem:[%s2776_s8 + $0x9f8] sm:$0xff] }
 0x10a   : > { %2110 = vmatpush1.bf16.msra.mxu1 %v2109_v34  ;;  %1864 = vmatprep.subr.bf16.mxu0 %v1863_v35  ;;  %v586_v34 = vld [vmem:[%s2776_s8 + $0x880] sm:$0xff] }
 0x10b   : > { %2112 = vmatprep.subr.bf16.mxu1 %v2111_v39  ;;  %v590_v35 = vld [vmem:[%s2776_s8 + $0x8a0] sm:$0xff]  ;;  %v595_v39 = vld [vmem:[%s2776_s8 + $0x8c8] sm:$0xff] }
 0x10c   : > { %v1885_v43 = vpack.c.bf16 %v590_v35, %v586_v34  ;;  %v632_v34 = vld [vmem:[%s2776_s8 + $0x9f0] sm:$0xff]  ;;  %v635_v35 = vld [vmem:[%s2776_s8 + $0xa08] sm:$0xff] }
 0x10d   : > { %1866 = vmatpush1.bf16.msra.mxu0 %v1865_v45  ;;  %v1887_v45 = vpack.c.bf16 %v599_v40, %v595_v39  ;;  %v1907_v41 = vpack.c.bf16 %v639_v36, %v635_v35 }
 0x10e   : > { %2114 = vmatpush1.bf16.msra.mxu1 %v2113_v46  ;;  %1868 = vmatprep.subr.bf16.mxu0 %v1867_v47  ;;  %v594_v46 = vld [vmem:[%s2776_s8 + $0x8c0] sm:$0xff] }
 0x10f   : > { %2116 = vmatprep.subr.bf16.mxu1 %v2115_v51  ;;  %v598_v47 = vld [vmem:[%s2776_s8 + $0x8e0] sm:$0xff]  ;;  %v603_v51 = vld [vmem:[%s2776_s8 + $0x908] sm:$0xff] }
 0x110   : > { %v1889_v55 = vpack.c.bf16 %v598_v47, %v594_v46  ;;  %v640_v46 = vld [vmem:[%s2776_s8 + $0xa30] sm:$0xff]  ;;  %v643_v47 = vld [vmem:[%s2776_s8 + $0xa48] sm:$0xff] }
 0x111   : > { %1870 = vmatpush1.bf16.msra.mxu0 %v1869_v57  ;;  %v1891_v57 = vpack.c.bf16 %v607_v52, %v603_v51  ;;  %v1911_v53 = vpack.c.bf16 %v647_v48, %v643_v47 }
 0x112   : > { %2118 = vmatpush1.bf16.msra.mxu1 %v2117_v58  ;;  %1872 = vmatprep.subr.bf16.mxu0 %v1871_v59  ;;  %v602_v58 = vld [vmem:[%s2776_s8 + $0x900] sm:$0xff] }
 0x113   : > { %2120 = vmatprep.subr.bf16.mxu1 %v2119_v63  ;;  %v606_v59 = vld [vmem:[%s2776_s8 + $0x920] sm:$0xff]  ;;  %v611_v63 = vld [vmem:[%s2776_s8 + $0x948] sm:$0xff] }
 0x114   : > { %v1893_v3 = vpack.c.bf16 %v606_v59, %v602_v58  ;;  %v648_v58 = vld [vmem:[%s2776_s8 + $0xa70] sm:$0xff]  ;;  %v651_v59 = vld [vmem:[%s2776_s8 + $0xa88] sm:$0xff] }
 0x115   : > { %1874 = vmatpush1.bf16.msra.mxu0 %v1873_v5  ;;  %v1895_v5 = vpack.c.bf16 %v615_v0, %v611_v63  ;;  %v1915_v1 = vpack.c.bf16 %v655_v60, %v651_v59 }
 0x116   : > { %2122 = vmatpush1.bf16.msra.mxu1 %v2121_v6  ;;  %1876 = vmatprep.subr.bf16.mxu0 %v1875_v7  ;;  %v610_v6 = vld [vmem:[%s2776_s8 + $0x940] sm:$0xff] }
 0x117   : > { %2124 = vmatprep.subr.bf16.mxu1 %v2123_v11  ;;  %v614_v7 = vld [vmem:[%s2776_s8 + $0x960] sm:$0xff]  ;;  %v619_v11 = vld [vmem:[%s2776_s8 + $0x988] sm:$0xff] }
 0x118   : > { %954 = vmatmul.mubr.f32.vlgmr.msra.gmra.mrb[0].mxu0 %v308_v17  ;;  %v1897_v15 = vpack.c.bf16 %v614_v7, %v610_v6  ;;  %v656_v6 = vld [vmem:[%s2776_s8 + $0xab0] sm:$0xff]  ;;  %v659_v7 = vld [vmem:[%s2776_s8 + $0xac8] sm:$0xff] }
 0x119   : > { %1878 = vmatpush1.bf16.msra.mxu0 %v1877_v18  ;;  %1238 = vmatmul.mubr.f32.vlgmr.msra.gmra.mrb[0].mxu1 %v308_v17  ;;  %v1899_v17 = vpack.c.bf16 %v623_v12, %v619_v11  ;;  %v618_v18 = vld [vmem:[%s2776_s8 + $0x980] sm:$0xff]  ;;  %v1919_v13 = vpack.c.bf16 %v663_v8, %v659_v7 }
 0x11a   : > { %2126 = vmatpush1.bf16.msra.mxu1 %v2125_v19  ;;  %1880 = vmatprep.subr.bf16.mxu0 %v1879_v20  ;;  %v622_v19 = vld [vmem:[%s2776_s8 + $0x9a0] sm:$0xff]  ;;  %v620_v20 = vld [vmem:[%s2776_s8 + $0x990] sm:$0xff] }
 0x11b   : > { %2128 = vmatprep.subr.bf16.mxu1 %v2127_v24  ;;  %1024 = vmatprep.mubr.f32.mxu0 %v311_v30  ;;  %v631_v24 = vld [vmem:[%s2776_s8 + $0x9e8] sm:$0xff]  ;;  %v1901_v27 = vpack.c.bf16 %v622_v19, %v618_v18  ;;  %v2149_v28 = vpack.c.bf16 %v624_v22, %v620_v20  ;;  %v664_v18 = vld [vmem:[%s2776_s8 + $0xaf0] sm:$0xff]  ;;  %v673_v22 = vld [vmem:[%s2776_s8 + $0xb38] sm:$0xff] }
 0x11c   : > { %1308 = vmatprep.mubr.f32.mxu1 %v311_v30  ;;  %v1903_v29 = vpack.c.bf16 %v631_v24, %v627_v23  ;;  %v626_v30 = vld [vmem:[%s2776_s8 + $0x9c0] sm:$0xff]  ;;  %v667_v19 = vld [vmem:[%s2776_s8 + $0xb08] sm:$0xff] }
 0x11d   : > { %1882 = vmatpush1.bf16.msra.mxu0 %v1881_v31  ;;  %v630_v31 = vld [vmem:[%s2776_s8 + $0x9e0] sm:$0xff]  ;;  %v671_v20 = vld [vmem:[%s2776_s8 + $0xb28] sm:$0xff] }
 0x11e   : > { %2130 = vmatpush1.bf16.msra.mxu1 %v2129_v32  ;;  %1884 = vmatprep.subr.bf16.mxu0 %v1883_v33  ;;  %v628_v32 = vld [vmem:[%s2776_s8 + $0x9d0] sm:$0xff]  ;;  %v2151_v33 = vpack.c.bf16 %v633_v26, %v629_v25  ;;  %v1905_v39 = vpack.c.bf16 %v630_v31, %v626_v30  ;;  %v1923_v25 = vpack.c.bf16 %v671_v20, %v667_v19  ;;  %v666_v26 = vld [vmem:[%s2776_s8 + $0xb00] sm:$0xff]  ;;  %v675_v31 = vld [vmem:[%s2776_s8 + $0xb48] sm:$0xff] }
 0x11f   : > { %2132 = vmatprep.subr.bf16.mxu1 %v2131_v37  ;;  %v637_v37 = vld [vmem:[%s2776_s8 + $0xa18] sm:$0xff]  ;;  %v2153_v40 = vpack.c.bf16 %v632_v34, %v628_v32  ;;  %v672_v30 = vld [vmem:[%s2776_s8 + $0xb30] sm:$0xff]  ;;  %v679_v32 = vld [vmem:[%s2776_s8 + $0xb68] sm:$0xff] }
 0x120   : > { %v681_v34 = vld [vmem:[%s2776_s8 + $0xb78] sm:$0xff]  ;;  %v310_v19 = vld [vmem:[#allocation2 + $0x20] sm:$0xff] }
 0x121   : > { %1886 = vmatpush1.bf16.msra.mxu0 %v1885_v43  ;;  %v638_v43 = vld [vmem:[%s2776_s8 + $0xa20] sm:$0xff] }
 0x122   : > { %2134 = vmatpush1.bf16.msra.mxu1 %v2133_v44  ;;  %1888 = vmatprep.subr.bf16.mxu0 %v1887_v45  ;;  %v636_v44 = vld [vmem:[%s2776_s8 + $0xa10] sm:$0xff]  ;;  %v2155_v45 = vpack.c.bf16 %v641_v38, %v637_v37  ;;  %v1909_v51 = vpack.c.bf16 %v638_v43, %v634_v42  ;;  %v1927_v37 = vpack.c.bf16 %v679_v32, %v675_v31  ;;  %v674_v38 = vld [vmem:[%s2776_s8 + $0xb40] sm:$0xff]  ;;  %v683_v43 = vld [vmem:[%s2776_s8 + $0xb88] sm:$0xff] }
 0x123   : > { %2136 = vmatprep.subr.bf16.mxu1 %v2135_v49  ;;  %v645_v49 = vld [vmem:[%s2776_s8 + $0xa58] sm:$0xff]  ;;  %v2157_v52 = vpack.c.bf16 %v640_v46, %v636_v44  ;;  %v680_v42 = vld [vmem:[%s2776_s8 + $0xb70] sm:$0xff]  ;;  %v687_v44 = vld [vmem:[%s2776_s8 + $0xba8] sm:$0xff] }
 0x124   : > { %v689_v46 = vld [vmem:[%s2776_s8 + $0xbb8] sm:$0xff] }
 0x125   : > { %1890 = vmatpush1.bf16.msra.mxu0 %v1889_v55  ;;  %v646_v55 = vld [vmem:[%s2776_s8 + $0xa60] sm:$0xff]  ;;  %v721_v31 = vld [vmem:[%s2776_s8 + $0xcb8] sm:$0xff] }
 0x126   : > { %2138 = vmatpush1.bf16.msra.mxu1 %v2137_v56  ;;  %1892 = vmatprep.subr.bf16.mxu0 %v1891_v57  ;;  %v644_v56 = vld [vmem:[%s2776_s8 + $0xa50] sm:$0xff]  ;;  %v2159_v57 = vpack.c.bf16 %v649_v50, %v645_v49  ;;  %v1913_v63 = vpack.c.bf16 %v646_v55, %v642_v54  ;;  %v1931_v49 = vpack.c.bf16 %v687_v44, %v683_v43  ;;  %v682_v50 = vld [vmem:[%s2776_s8 + $0xb80] sm:$0xff]  ;;  %v691_v55 = vld [vmem:[%s2776_s8 + $0xbc8] sm:$0xff] }
 0x127   : > { %2140 = vmatprep.subr.bf16.mxu1 %v2139_v61  ;;  %v653_v61 = vld [vmem:[%s2776_s8 + $0xa98] sm:$0xff]  ;;  %v2161_v0 = vpack.c.bf16 %v648_v58, %v644_v56  ;;  %v688_v54 = vld [vmem:[%s2776_s8 + $0xbb0] sm:$0xff]  ;;  %v695_v56 = vld [vmem:[%s2776_s8 + $0xbe8] sm:$0xff] }
 0x128   : > { %v697_v58 = vld [vmem:[%s2776_s8 + $0xbf8] sm:$0xff] }
 0x129   : > { %1894 = vmatpush1.bf16.msra.mxu0 %v1893_v3  ;;  %v654_v3 = vld [vmem:[%s2776_s8 + $0xaa0] sm:$0xff]  ;;  %v313_v32 = vld [vmem:[#allocation2 + $0x38] sm:$0xff] }
 0x12a   : > { %2142 = vmatpush1.bf16.msra.mxu1 %v2141_v4  ;;  %1896 = vmatprep.subr.bf16.mxu0 %v1895_v5  ;;  %v652_v4 = vld [vmem:[%s2776_s8 + $0xa90] sm:$0xff]  ;;  %v2163_v5 = vpack.c.bf16 %v657_v62, %v653_v61  ;;  %v1917_v11 = vpack.c.bf16 %v654_v3, %v650_v2  ;;  %v1935_v61 = vpack.c.bf16 %v695_v56, %v691_v55  ;;  %v690_v62 = vld [vmem:[%s2776_s8 + $0xbc0] sm:$0xff]  ;;  %v699_v3 = vld [vmem:[%s2776_s8 + $0xc08] sm:$0xff] }
 0x12b   : > { %2144 = vmatprep.subr.bf16.mxu1 %v2143_v9  ;;  %v661_v9 = vld [vmem:[%s2776_s8 + $0xad8] sm:$0xff]  ;;  %v2165_v12 = vpack.c.bf16 %v656_v6, %v652_v4  ;;  %v696_v2 = vld [vmem:[%s2776_s8 + $0xbf0] sm:$0xff]  ;;  %v703_v4 = vld [vmem:[%s2776_s8 + $0xc28] sm:$0xff] }
 0x12c   : > { %v705_v6 = vld [vmem:[%s2776_s8 + $0xc38] sm:$0xff] }
 0x12d   : > { %1898 = vmatpush1.bf16.msra.mxu0 %v1897_v15  ;;  %v662_v15 = vld [vmem:[%s2776_s8 + $0xae0] sm:$0xff]  ;;  %v725_v43 = vld [vmem:[%s2776_s8 + $0xcd8] sm:$0xff] }
 0x12e   : > { %2146 = vmatpush1.bf16.msra.mxu1 %v2145_v16  ;;  %1900 = vmatprep.subr.bf16.mxu0 %v1899_v17  ;;  %v660_v16 = vld [vmem:[%s2776_s8 + $0xad0] sm:$0xff]  ;;  %v2167_v17 = vpack.c.bf16 %v665_v10, %v661_v9  ;;  %v1921_v23 = vpack.c.bf16 %v662_v15, %v658_v14  ;;  %v1939_v9 = vpack.c.bf16 %v703_v4, %v699_v3  ;;  %v698_v10 = vld [vmem:[%s2776_s8 + $0xc00] sm:$0xff]  ;;  %v707_v15 = vld [vmem:[%s2776_s8 + $0xc48] sm:$0xff] }
 0x12f   : > { %2148 = vmatprep.subr.bf16.mxu1 %v2147_v21  ;;  %v669_v21 = vld [vmem:[%s2776_s8 + $0xb18] sm:$0xff]  ;;  %v2169_v24 = vpack.c.bf16 %v664_v18, %v660_v16  ;;  %v704_v14 = vld [vmem:[%s2776_s8 + $0xc30] sm:$0xff]  ;;  %v711_v16 = vld [vmem:[%s2776_s8 + $0xc68] sm:$0xff] }
 0x130   : > { %v713_v18 = vld [vmem:[%s2776_s8 + $0xc78] sm:$0xff] }
 0x131   : > { %1902 = vmatpush1.bf16.msra.mxu0 %v1901_v27  ;;  %v670_v27 = vld [vmem:[%s2776_s8 + $0xb20] sm:$0xff]  ;;  %v729_v44 = vld [vmem:[%s2776_s8 + $0xcf8] sm:$0xff] }
 0x132   : > { %2150 = vmatpush1.bf16.msra.mxu1 %v2149_v28  ;;  %1904 = vmatprep.subr.bf16.mxu0 %v1903_v29  ;;  %v668_v28 = vld [vmem:[%s2776_s8 + $0xb10] sm:$0xff]  ;;  %v2171_v29 = vpack.c.bf16 %v673_v22, %v669_v21  ;;  %v1925_v35 = vpack.c.bf16 %v670_v27, %v666_v26  ;;  %v1943_v22 = vpack.c.bf16 %v711_v16, %v707_v15  ;;  %v733_v55 = vld [vmem:[%s2776_s8 + $0xd18] sm:$0xff] }
 0x133   : > { %2152 = vmatprep.subr.bf16.mxu1 %v2151_v33  ;;  %v677_v33 = vld [vmem:[%s2776_s8 + $0xb58] sm:$0xff]  ;;  %v2173_v36 = vpack.c.bf16 %v672_v30, %v668_v28  ;;  %v712_v27 = vld [vmem:[%s2776_s8 + $0xc70] sm:$0xff]  ;;  %v715_v28 = vld [vmem:[%s2776_s8 + $0xc88] sm:$0xff] }
 0x134   : > { %v717_v30 = vld [vmem:[%s2776_s8 + $0xc98] sm:$0xff] }
 0x135   : > { %1906 = vmatpush1.bf16.msra.mxu0 %v1905_v39  ;;  %v678_v39 = vld [vmem:[%s2776_s8 + $0xb60] sm:$0xff]  ;;  %v737_v56 = vld [vmem:[%s2776_s8 + $0xd38] sm:$0xff] }
 0x136   : > { %2154 = vmatpush1.bf16.msra.mxu1 %v2153_v40  ;;  %1908 = vmatprep.subr.bf16.mxu0 %v1907_v41  ;;  %v676_v40 = vld [vmem:[%s2776_s8 + $0xb50] sm:$0xff]  ;;  %v2175_v41 = vpack.c.bf16 %v681_v34, %v677_v33  ;;  %v1929_v47 = vpack.c.bf16 %v678_v39, %v674_v38  ;;  %v2195_v39 = vpack.c.bf16 %v721_v31, %v717_v30  ;;  %v741_v3 = vld [vmem:[%s2776_s8 + $0xd58] sm:$0xff] }
 0x137   : > { %2156 = vmatprep.subr.bf16.mxu1 %v2155_v45  ;;  %v685_v45 = vld [vmem:[%s2776_s8 + $0xb98] sm:$0xff]  ;;  %v2177_v48 = vpack.c.bf16 %v680_v42, %v676_v40  ;;  %v716_v38 = vld [vmem:[%s2776_s8 + $0xc90] sm:$0xff]  ;;  %v727_v42 = vld [vmem:[%s2776_s8 + $0xce8] sm:$0xff] }
 0x138   : > { %v720_v40 = vld [vmem:[%s2776_s8 + $0xcb0] sm:$0xff]  ;;  %v745_v4 = vld [vmem:[%s2776_s8 + $0xd78] sm:$0xff] }
 0x139   : > { %1910 = vmatpush1.bf16.msra.mxu0 %v1909_v51  ;;  %v686_v51 = vld [vmem:[%s2776_s8 + $0xba0] sm:$0xff]  ;;  %v749_v15 = vld [vmem:[%s2776_s8 + $0xd98] sm:$0xff] }
 0x13a   : > { %2158 = vmatpush1.bf16.msra.mxu1 %v2157_v52  ;;  %1912 = vmatprep.subr.bf16.mxu0 %v1911_v53  ;;  %v684_v52 = vld [vmem:[%s2776_s8 + $0xb90] sm:$0xff]  ;;  %v2179_v53 = vpack.c.bf16 %v689_v46, %v685_v45  ;;  %v1933_v59 = vpack.c.bf16 %v686_v51, %v682_v50  ;;  %v2197_v46 = vpack.c.bf16 %v720_v40, %v716_v38  ;;  %v753_v16 = vld [vmem:[%s2776_s8 + $0xdb8] sm:$0xff]  ;;  %v767_v38 = vld [vmem:[%s2776_s8 + $0xe28] sm:$0xff] }
 0x13b   : > { %2160 = vmatprep.subr.bf16.mxu1 %v2159_v57  ;;  %v693_v57 = vld [vmem:[%s2776_s8 + $0xbd8] sm:$0xff]  ;;  %v2181_v60 = vpack.c.bf16 %v688_v54, %v684_v52  ;;  %v724_v50 = vld [vmem:[%s2776_s8 + $0xcd0] sm:$0xff]  ;;  %v2199_v51 = vpack.c.bf16 %v729_v44, %v725_v43  ;;  %v735_v54 = vld [vmem:[%s2776_s8 + $0xd28] sm:$0xff] }
 0x13c   : > { %v728_v52 = vld [vmem:[%s2776_s8 + $0xcf0] sm:$0xff]  ;;  %v769_v40 = vld [vmem:[%s2776_s8 + $0xe38] sm:$0xff]  ;;  %v762_v44 = vld [vmem:[%s2776_s8 + $0xe00] sm:$0xff] }
 0x13d   : > { %1914 = vmatpush1.bf16.msra.mxu0 %v1913_v63  ;;  %v694_v63 = vld [vmem:[%s2776_s8 + $0xbe0] sm:$0xff] }
 0x13e   : > { %2162 = vmatpush1.bf16.msra.mxu1 %v2161_v0  ;;  %1916 = vmatprep.subr.bf16.mxu0 %v1915_v1  ;;  %v692_v0 = vld [vmem:[%s2776_s8 + $0xbd0] sm:$0xff]  ;;  %v2183_v1 = vpack.c.bf16 %v697_v58, %v693_v57  ;;  %v1937_v7 = vpack.c.bf16 %v694_v63, %v690_v62  ;;  %v2201_v58 = vpack.c.bf16 %v728_v52, %v724_v50  ;;  %v775_v50 = vld [vmem:[%s2776_s8 + $0xe68] sm:$0xff]  ;;  %v777_v52 = vld [vmem:[%s2776_s8 + $0xe78] sm:$0xff] }
 0x13f   : > { %2164 = vmatprep.subr.bf16.mxu1 %v2163_v5  ;;  %v701_v5 = vld [vmem:[%s2776_s8 + $0xc18] sm:$0xff]  ;;  %v2185_v8 = vpack.c.bf16 %v696_v2, %v692_v0  ;;  %v732_v62 = vld [vmem:[%s2776_s8 + $0xd10] sm:$0xff]  ;;  %v2203_v63 = vpack.c.bf16 %v737_v56, %v733_v55  ;;  %v743_v2 = vld [vmem:[%s2776_s8 + $0xd68] sm:$0xff] }
 0x140   : > { %v736_v0 = vld [vmem:[%s2776_s8 + $0xd30] sm:$0xff]  ;;  %v770_v56 = vld [vmem:[%s2776_s8 + $0xe40] sm:$0xff] }
 0x141   : > { %1918 = vmatpush1.bf16.msra.mxu0 %v1917_v11  ;;  %v702_v11 = vld [vmem:[%s2776_s8 + $0xc20] sm:$0xff] }
 0x142   : > { %2166 = vmatpush1.bf16.msra.mxu1 %v2165_v12  ;;  %1920 = vmatprep.subr.bf16.mxu0 %v1919_v13  ;;  %v700_v12 = vld [vmem:[%s2776_s8 + $0xc10] sm:$0xff]  ;;  %v2187_v13 = vpack.c.bf16 %v705_v6, %v701_v5  ;;  %v1941_v20 = vpack.c.bf16 %v702_v11, %v698_v10  ;;  %v2205_v6 = vpack.c.bf16 %v736_v0, %v732_v62  ;;  %v783_v62 = vld [vmem:[%s2776_s8 + $0xea8] sm:$0xff]  ;;  %v785_v0 = vld [vmem:[%s2776_s8 + $0xeb8] sm:$0xff] }
 0x143   : > { %2168 = vmatprep.subr.bf16.mxu1 %v2167_v17  ;;  %v709_v17 = vld [vmem:[%s2776_s8 + $0xc58] sm:$0xff]  ;;  %v2189_v21 = vpack.c.bf16 %v704_v14, %v700_v12  ;;  %v740_v10 = vld [vmem:[%s2776_s8 + $0xd50] sm:$0xff]  ;;  %v2207_v11 = vpack.c.bf16 %v745_v4, %v741_v3  ;;  %v751_v14 = vld [vmem:[%s2776_s8 + $0xda8] sm:$0xff] }
 0x144   : > { %v2191_v26 = vpack.c.bf16 %v713_v18, %v709_v17  ;;  %v744_v12 = vld [vmem:[%s2776_s8 + $0xd70] sm:$0xff]  ;;  %v778_v4 = vld [vmem:[%s2776_s8 + $0xe80] sm:$0xff] }
 0x145   : > { %1922 = vmatpush1.bf16.msra.mxu0 %v1921_v23  ;;  %v706_v23 = vld [vmem:[%s2776_s8 + $0xc40] sm:$0xff]  ;;  %v2209_v18 = vpack.c.bf16 %v744_v12, %v740_v10  ;;  %v791_v10 = vld [vmem:[%s2776_s8 + $0xee8] sm:$0xff]  ;;  %v793_v12 = vld [vmem:[%s2776_s8 + $0xef8] sm:$0xff] }
 0x146   : > { %2170 = vmatpush1.bf16.msra.mxu1 %v2169_v24  ;;  %1924 = vmatprep.subr.bf16.mxu0 %v1923_v25  ;;  %v710_v24 = vld [vmem:[%s2776_s8 + $0xc60] sm:$0xff]  ;;  %v708_v25 = vld [vmem:[%s2776_s8 + $0xc50] sm:$0xff] }
 0x147   : > { %2172 = vmatprep.subr.bf16.mxu1 %v2171_v29  ;;  %v719_v29 = vld [vmem:[%s2776_s8 + $0xca8] sm:$0xff]  ;;  %v1945_v33 = vpack.c.bf16 %v710_v24, %v706_v23  ;;  %v2193_v34 = vpack.c.bf16 %v712_v27, %v708_v25  ;;  %v2211_v23 = vpack.c.bf16 %v753_v16, %v749_v15  ;;  %v752_v24 = vld [vmem:[%s2776_s8 + $0xdb0] sm:$0xff]  ;;  %v757_v27 = vld [vmem:[%s2776_s8 + $0xdd8] sm:$0xff] }
 0x148   : > { %v755_v25 = vld [vmem:[%s2776_s8 + $0xdc8] sm:$0xff]  ;;  %v786_v16 = vld [vmem:[%s2776_s8 + $0xec0] sm:$0xff] }
 0x149   : > { %1926 = vmatpush1.bf16.msra.mxu0 %v1925_v35  ;;  %v1947_v35 = vpack.c.bf16 %v719_v29, %v715_v28  ;;  %v761_v28 = vld [vmem:[%s2776_s8 + $0xdf8] sm:$0xff] }
 0x14a   : > { %2174 = vmatpush1.bf16.msra.mxu1 %v2173_v36  ;;  %1928 = vmatprep.subr.bf16.mxu0 %v1927_v37  ;;  %v714_v36 = vld [vmem:[%s2776_s8 + $0xc80] sm:$0xff] }
 0x14b   : > { %2176 = vmatprep.subr.bf16.mxu1 %v2175_v41  ;;  %v718_v37 = vld [vmem:[%s2776_s8 + $0xca0] sm:$0xff]  ;;  %v723_v41 = vld [vmem:[%s2776_s8 + $0xcc8] sm:$0xff] }
 0x14c   : > { %v1949_v45 = vpack.c.bf16 %v718_v37, %v714_v36  ;;  %v760_v36 = vld [vmem:[%s2776_s8 + $0xdf0] sm:$0xff]  ;;  %v763_v37 = vld [vmem:[%s2776_s8 + $0xe08] sm:$0xff] }
 0x14d   : > { %1930 = vmatpush1.bf16.msra.mxu0 %v1929_v47  ;;  %v1951_v47 = vpack.c.bf16 %v727_v42, %v723_v41  ;;  %v1971_v43 = vpack.c.bf16 %v767_v38, %v763_v37 }
 0x14e   : > { %2178 = vmatpush1.bf16.msra.mxu1 %v2177_v48  ;;  %1932 = vmatprep.subr.bf16.mxu0 %v1931_v49  ;;  %v722_v48 = vld [vmem:[%s2776_s8 + $0xcc0] sm:$0xff] }
 0x14f   : > { %2180 = vmatprep.subr.bf16.mxu1 %v2179_v53  ;;  %v726_v49 = vld [vmem:[%s2776_s8 + $0xce0] sm:$0xff]  ;;  %v731_v53 = vld [vmem:[%s2776_s8 + $0xd08] sm:$0xff] }
 0x150   : > { %v1953_v57 = vpack.c.bf16 %v726_v49, %v722_v48  ;;  %v768_v48 = vld [vmem:[%s2776_s8 + $0xe30] sm:$0xff]  ;;  %v771_v49 = vld [vmem:[%s2776_s8 + $0xe48] sm:$0xff] }
 0x151   : > { %1934 = vmatpush1.bf16.msra.mxu0 %v1933_v59  ;;  %v1955_v59 = vpack.c.bf16 %v735_v54, %v731_v53  ;;  %v1975_v55 = vpack.c.bf16 %v775_v50, %v771_v49  ;;  %v810_v49 = vld [vmem:[%s2776_s8 + $0xf80] sm:$0xff]  ;;  %v812_v50 = vld [vmem:[%s2776_s8 + $0xf90] sm:$0xff] }
 0x152   : > { %2182 = vmatpush1.bf16.msra.mxu1 %v2181_v60  ;;  %1936 = vmatprep.subr.bf16.mxu0 %v1935_v61  ;;  %v730_v60 = vld [vmem:[%s2776_s8 + $0xd00] sm:$0xff] }
 0x153   : > { %2184 = vmatprep.subr.bf16.mxu1 %v2183_v1  ;;  %v734_v61 = vld [vmem:[%s2776_s8 + $0xd20] sm:$0xff]  ;;  %v739_v1 = vld [vmem:[%s2776_s8 + $0xd48] sm:$0xff] }
 0x154   : > { %v1957_v5 = vpack.c.bf16 %v734_v61, %v730_v60  ;;  %v776_v60 = vld [vmem:[%s2776_s8 + $0xe70] sm:$0xff]  ;;  %v779_v61 = vld [vmem:[%s2776_s8 + $0xe88] sm:$0xff] }
 0x155   : > { %1938 = vmatpush1.bf16.msra.mxu0 %v1937_v7  ;;  %v1959_v7 = vpack.c.bf16 %v743_v2, %v739_v1  ;;  %v1979_v3 = vpack.c.bf16 %v783_v62, %v779_v61 }
 0x156   : > { %2186 = vmatpush1.bf16.msra.mxu1 %v2185_v8  ;;  %1940 = vmatprep.subr.bf16.mxu0 %v1939_v9  ;;  %v738_v8 = vld [vmem:[%s2776_s8 + $0xd40] sm:$0xff] }
 0x157   : > { %2188 = vmatprep.subr.bf16.mxu1 %v2187_v13  ;;  %v742_v9 = vld [vmem:[%s2776_s8 + $0xd60] sm:$0xff]  ;;  %v747_v13 = vld [vmem:[%s2776_s8 + $0xd88] sm:$0xff] }
 0x158   : > { %1025 = vmatmul.mubr.f32.vlgmr.msra.gmra.mrb[0].mxu0 %v310_v19  ;;  %v1961_v17 = vpack.c.bf16 %v742_v9, %v738_v8  ;;  %v784_v8 = vld [vmem:[%s2776_s8 + $0xeb0] sm:$0xff]  ;;  %v787_v9 = vld [vmem:[%s2776_s8 + $0xec8] sm:$0xff] }
 0x159   : > { %1942 = vmatpush1.bf16.msra.mxu0 %v1941_v20  ;;  %1309 = vmatmul.mubr.f32.vlgmr.msra.gmra.mrb[0].mxu1 %v310_v19  ;;  %v1963_v19 = vpack.c.bf16 %v751_v14, %v747_v13  ;;  %v746_v20 = vld [vmem:[%s2776_s8 + $0xd80] sm:$0xff]  ;;  %v1983_v15 = vpack.c.bf16 %v791_v10, %v787_v9 }
 0x15a   : > { %2190 = vmatpush1.bf16.msra.mxu1 %v2189_v21  ;;  %1944 = vmatprep.subr.bf16.mxu0 %v1943_v22  ;;  %v750_v21 = vld [vmem:[%s2776_s8 + $0xda0] sm:$0xff]  ;;  %v748_v22 = vld [vmem:[%s2776_s8 + $0xd90] sm:$0xff] }
 0x15b   : > { %2192 = vmatprep.subr.bf16.mxu1 %v2191_v26  ;;  %1736 = vmatprep.mubr.msk.f32.mxu0 %vm814_vm0, %v313_v32  ;;  %v759_v26 = vld [vmem:[%s2776_s8 + $0xde8] sm:$0xff]  ;;  %v1965_v29 = vpack.c.bf16 %v750_v21, %v746_v20  ;;  %v2213_v30 = vpack.c.bf16 %v752_v24, %v748_v22  ;;  %v792_v20 = vld [vmem:[%s2776_s8 + $0xef0] sm:$0xff]  ;;  %v801_v24 = vld [vmem:[%s2776_s8 + $0xf38] sm:$0xff] }
 0x15c   : > { %1737 = vmatprep.mubr.msk.f32.mxu1 %vm814_vm0, %v313_v32  ;;  %v1967_v31 = vpack.c.bf16 %v759_v26, %v755_v25  ;;  %v754_v32 = vld [vmem:[%s2776_s8 + $0xdc0] sm:$0xff]  ;;  %v795_v21 = vld [vmem:[%s2776_s8 + $0xf08] sm:$0xff] }
 0x15d   : > { %1946 = vmatpush1.bf16.msra.mxu0 %v1945_v33  ;;  %v758_v33 = vld [vmem:[%s2776_s8 + $0xde0] sm:$0xff]  ;;  %v799_v22 = vld [vmem:[%s2776_s8 + $0xf28] sm:$0xff] }
 0x15e   : > { %2194 = vmatpush1.bf16.msra.mxu1 %v2193_v34  ;;  %1948 = vmatprep.subr.bf16.mxu0 %v1947_v35  ;;  %v756_v34 = vld [vmem:[%s2776_s8 + $0xdd0] sm:$0xff]  ;;  %v2215_v35 = vpack.c.bf16 %v761_v28, %v757_v27  ;;  %v1969_v41 = vpack.c.bf16 %v758_v33, %v754_v32  ;;  %v1987_v27 = vpack.c.bf16 %v799_v22, %v795_v21  ;;  %v794_v28 = vld [vmem:[%s2776_s8 + $0xf00] sm:$0xff]  ;;  %v803_v33 = vld [vmem:[%s2776_s8 + $0xf48] sm:$0xff] }
 0x15f   : > { %2196 = vmatprep.subr.bf16.mxu1 %v2195_v39  ;;  %v765_v39 = vld [vmem:[%s2776_s8 + $0xe18] sm:$0xff]  ;;  %v2217_v42 = vpack.c.bf16 %v760_v36, %v756_v34  ;;  %v800_v32 = vld [vmem:[%s2776_s8 + $0xf30] sm:$0xff]  ;;  %v807_v34 = vld [vmem:[%s2776_s8 + $0xf68] sm:$0xff] }
 0x160   : > { %v809_v36 = vld [vmem:[%s2776_s8 + $0xf78] sm:$0xff] }
 0x161   : > { %1950 = vmatpush1.bf16.msra.mxu0 %v1949_v45  ;;  %v766_v45 = vld [vmem:[%s2776_s8 + $0xe20] sm:$0xff] }
 0x162   : > { %2198 = vmatpush1.bf16.msra.mxu1 %v2197_v46  ;;  %1952 = vmatprep.subr.bf16.mxu0 %v1951_v47  ;;  %v764_v46 = vld [vmem:[%s2776_s8 + $0xe10] sm:$0xff]  ;;  %v2219_v47 = vpack.c.bf16 %v769_v40, %v765_v39  ;;  %v1973_v53 = vpack.c.bf16 %v766_v45, %v762_v44  ;;  %v1991_v39 = vpack.c.bf16 %v807_v34, %v803_v33  ;;  %v802_v40 = vld [vmem:[%s2776_s8 + $0xf40] sm:$0xff] }
 0x163   : > { %2200 = vmatprep.subr.bf16.mxu1 %v2199_v51  ;;  %v773_v51 = vld [vmem:[%s2776_s8 + $0xe58] sm:$0xff]  ;;  %v2221_v54 = vpack.c.bf16 %v768_v48, %v764_v46  ;;  %v808_v44 = vld [vmem:[%s2776_s8 + $0xf70] sm:$0xff] }
 0x164   : > { %v813_v48 = vld [vmem:[%s2776_s8 + $0xf98] sm:$0xff] }
 0x165   : > { %1954 = vmatpush1.bf16.msra.mxu0 %v1953_v57  ;;  %v774_v57 = vld [vmem:[%s2776_s8 + $0xe60] sm:$0xff] }
 0x166   : > { %2202 = vmatpush1.bf16.msra.mxu1 %v2201_v58  ;;  %1956 = vmatprep.subr.bf16.mxu0 %v1955_v59  ;;  %v772_v58 = vld [vmem:[%s2776_s8 + $0xe50] sm:$0xff]  ;;  %v2223_v59 = vpack.c.bf16 %v777_v52, %v773_v51  ;;  %v1977_v1 = vpack.c.bf16 %v774_v57, %v770_v56 }
 0x167   : > { %2204 = vmatprep.subr.bf16.mxu1 %v2203_v63  ;;  %v781_v63 = vld [vmem:[%s2776_s8 + $0xe98] sm:$0xff]  ;;  %v2225_v2 = vpack.c.bf16 %v776_v60, %v772_v58  ;;  %v312_v51 = vld [vmem:[#allocation2 + $0x30] sm:$0xff] }
 0x169   : > { %1958 = vmatpush1.bf16.msra.mxu0 %v1957_v5  ;;  %v782_v5 = vld [vmem:[%s2776_s8 + $0xea0] sm:$0xff] }
 0x16a   : > { %2206 = vmatpush1.bf16.msra.mxu1 %v2205_v6  ;;  %1960 = vmatprep.subr.bf16.mxu0 %v1959_v7  ;;  %v780_v6 = vld [vmem:[%s2776_s8 + $0xe90] sm:$0xff]  ;;  %v2227_v7 = vpack.c.bf16 %v785_v0, %v781_v63  ;;  %v1981_v13 = vpack.c.bf16 %v782_v5, %v778_v4 }
 0x16b   : > { %2208 = vmatprep.subr.bf16.mxu1 %v2207_v11  ;;  %v789_v11 = vld [vmem:[%s2776_s8 + $0xed8] sm:$0xff]  ;;  %v2229_v14 = vpack.c.bf16 %v784_v8, %v780_v6 }
 0x16d   : > { %1962 = vmatpush1.bf16.msra.mxu0 %v1961_v17  ;;  %v790_v17 = vld [vmem:[%s2776_s8 + $0xee0] sm:$0xff] }
 0x16e   : > { %2210 = vmatpush1.bf16.msra.mxu1 %v2209_v18  ;;  %1964 = vmatprep.subr.bf16.mxu0 %v1963_v19  ;;  %v788_v18 = vld [vmem:[%s2776_s8 + $0xed0] sm:$0xff]  ;;  %v2231_v19 = vpack.c.bf16 %v793_v12, %v789_v11  ;;  %v1985_v25 = vpack.c.bf16 %v790_v17, %v786_v16 }
 0x16f   : > { %2212 = vmatprep.subr.bf16.mxu1 %v2211_v23  ;;  %v797_v23 = vld [vmem:[%s2776_s8 + $0xf18] sm:$0xff]  ;;  %v2233_v26 = vpack.c.bf16 %v792_v20, %v788_v18 }
 0x171   : > { %1966 = vmatpush1.bf16.msra.mxu0 %v1965_v29  ;;  %v798_v29 = vld [vmem:[%s2776_s8 + $0xf20] sm:$0xff] }
 0x172   : > { %2214 = vmatpush1.bf16.msra.mxu1 %v2213_v30  ;;  %1968 = vmatprep.subr.bf16.mxu0 %v1967_v31  ;;  %v796_v30 = vld [vmem:[%s2776_s8 + $0xf10] sm:$0xff]  ;;  %v2235_v31 = vpack.c.bf16 %v801_v24, %v797_v23  ;;  %v1989_v37 = vpack.c.bf16 %v798_v29, %v794_v28 }
 0x173   : > { %2216 = vmatprep.subr.bf16.mxu1 %v2215_v35  ;;  %v805_v35 = vld [vmem:[%s2776_s8 + $0xf58] sm:$0xff]  ;;  %v2237_v38 = vpack.c.bf16 %v800_v32, %v796_v30 }
 0x175   : > { %1970 = vmatpush1.bf16.msra.mxu0 %v1969_v41  ;;  %v806_v41 = vld [vmem:[%s2776_s8 + $0xf60] sm:$0xff] }
 0x176   : > { %2218 = vmatpush1.bf16.msra.mxu1 %v2217_v42  ;;  %1972 = vmatprep.subr.bf16.mxu0 %v1971_v43  ;;  %v2239_v42 = vpack.c.bf16 %v809_v36, %v805_v35  ;;  %v804_v43 = vld [vmem:[%s2776_s8 + $0xf50] sm:$0xff]  ;;  %v1993_v45 = vpack.c.bf16 %v806_v41, %v802_v40 }
 0x177   : > { %2220 = vmatprep.subr.bf16.mxu1 %v2219_v47  ;;  %v2241_v46 = vpack.c.bf16 %v808_v44, %v804_v43  ;;  %v811_v47 = vld [vmem:[%s2776_s8 + $0xf88] sm:$0xff] }
 0x179   : > { %1974 = vmatpush1.bf16.msra.mxu0 %v1973_v53 }
 0x17a   : > { %2222 = vmatpush1.bf16.msra.mxu1 %v2221_v54  ;;  %1976 = vmatprep.subr.bf16.mxu0 %v1975_v55 }
 0x17b   : > { %2224 = vmatprep.subr.bf16.mxu1 %v2223_v59 }
 0x17d   : > { %1978 = vmatpush1.bf16.msra.mxu0 %v1977_v1 }
 0x17e   : > { %2226 = vmatpush1.bf16.msra.mxu1 %v2225_v2  ;;  %1980 = vmatprep.subr.bf16.mxu0 %v1979_v3 }
 0x17f   : > { %2228 = vmatprep.subr.bf16.mxu1 %v2227_v7 }
 0x181   : > { %1982 = vmatpush1.bf16.msra.mxu0 %v1981_v13 }
 0x182   : > { %2230 = vmatpush1.bf16.msra.mxu1 %v2229_v14  ;;  %1984 = vmatprep.subr.bf16.mxu0 %v1983_v15 }
 0x183   : > { %2232 = vmatprep.subr.bf16.mxu1 %v2231_v19 }
 0x185   : > { %1986 = vmatpush1.bf16.msra.mxu0 %v1985_v25 }
 0x186   : > { %2234 = vmatpush1.bf16.msra.mxu1 %v2233_v26  ;;  %1988 = vmatprep.subr.bf16.mxu0 %v1987_v27 }
 0x187   : > { %2236 = vmatprep.subr.bf16.mxu1 %v2235_v31 }
 0x189   : > { %1990 = vmatpush1.bf16.msra.mxu0 %v1989_v37 }
 0x18a   : > { %2238 = vmatpush1.bf16.msra.mxu1 %v2237_v38  ;;  %1992 = vmatprep.subr.bf16.mxu0 %v1991_v39 }
 0x18b   : > { %2240 = vmatprep.subr.bf16.mxu1 %v2239_v42 }
 0x18d   : > { %1994 = vmatpush1.bf16.msra.mxu0 %v1993_v45 }
 0x18e   : > { %2242 = vmatpush1.bf16.msra.mxu1 %v2241_v46  ;;  %1087 = vmatprep.subr.mxu0 %v811_v47 }
 0x18f   : > { %1371 = vmatprep.subr.mxu1 %v813_v48 }
 0x191   : > { %1088 = vmatpush1.msra.mxu0 %v810_v49 }
 0x192   : > { %1372 = vmatpush1.msra.mxu1 %v812_v50  ;;  %1096 = vmatmul.mubr.f32.vlgmr.msra.gmra.mrb[0].mxu0 %v312_v51 }
 0x193   : > { %1380 = vmatmul.mubr.f32.vlgmr.msra.gmra.mrb[0].mxu1 %v312_v51 }
 0x265   : > { %v3294_v52 = vpop.f32.mrb[0].mxu0 }
 0x266   : > { %v1386_v53 = vrot.slane %v3294_v52, 4  ;;  %v3297_v54 = vpop.f32.mrb[0].mxu1  ;;  %v3299_v55 = vpop.f32.mrb[1].mxu0 }
 0x267   : > { %v1398_v56 = vrot.slane %v3297_v54, 4  ;;  %v1392_v57 = vrot.slane %v3299_v55, 4  ;;  %v3303_v58 = vpop.f32.mrb[1].mxu1 }
 0x268   : > { %v1387_v59 = vadd.f32 %v1386_v53, %v3294_v52  ;;  %v1404_v60 = vrot.slane %v3303_v58, 4 }
 0x269   : > { %v1399_v61 = vadd.f32 %v1398_v56, %v3297_v54  ;;  %v1393_v62 = vadd.f32 %v1392_v57, %v3299_v55 }
 0x26a   : > { %v1388_v63 = vrot.slane %v1387_v59, 2  ;;  %v1405_v0 = vadd.f32 %v1404_v60, %v3303_v58 }
 0x26b   : > { %v1400_v1 = vrot.slane %v1399_v61, 2  ;;  %v1394_v2 = vrot.slane %v1393_v62, 2 }
 0x26c   : > { %v1389_v3 = vadd.f32 %v1388_v63, %v1387_v59  ;;  %v1406_v4 = vrot.slane %v1405_v0, 2 }
 0x26d   : > { %v1401_v5 = vadd.f32 %v1400_v1, %v1399_v61  ;;  %v1395_v6 = vadd.f32 %v1394_v2, %v1393_v62  ;;  %v1469_v2 = vlaneseq }
 0x26e   : > { %v1390_v7 = vrot.slane %v1389_v3, 1  ;;  %v1407_v8 = vadd.f32 %v1406_v4, %v1405_v0  ;;  %v2537_v0 = vmov 1966171168  }
 0x26f   : > { %v1402_v9 = vrot.slane %v1401_v5, 1  ;;  %v1396_v10 = vrot.slane %v1395_v6, 1  ;;  %v1467_v1 = vunpack.c.l.s4 %v2537_v0  ;;  %v1470_v4 = vshrl.u32 %v1469_v2, 7 }
 0x270   : > { %v1391_v11 = vadd.f32 %v1390_v7, %v1389_v3  ;;  %v1408_v12 = vrot.slane %v1407_v8, 1 }
 0x271   : > { %v1403_v13 = vadd.f32 %v1402_v9, %v1401_v5  ;;  %v1397_v14 = vadd.f32 %v1396_v10, %v1395_v6  ;;  %v1468_v3 = vunpack.c.0.s8 %v1467_v1 }
 0x272   : > { %v3310_v15 = vmul.f32 0.125, %v1391_v11  ;;  %v1409_v16 = vadd.f32 %v1408_v12, %v1407_v8 }
 0x273   : > { %v3312_v17 = vmul.f32 0.125, %v1403_v13  ;;  %v3314_v18 = vmul.f32 0.125, %v1397_v14  ;;  %v1471_v7 = vsub.s32 %v1468_v3, %v1470_v4 }
 0x274   : > { %v1415_v19 = vsub.f32 %v3294_v52, %v3310_v15  ;;  %v3318_v20 = vmul.f32 0.125, %v1409_v16  ;;  %v1459_v16 = vld [vmem:[%s2783_s17] sm:$0xf] }
 0x275   : > { %v1417_v21 = vsub.f32 %v3297_v54, %v3312_v17  ;;  %v1416_v22 = vsub.f32 %v3299_v55, %v3314_v18 }
 0x276   : > { %v1419_v23 = vmul.f32 %v1415_v19, %v1415_v19  ;;  %v1418_v24 = vsub.f32 %v3303_v58, %v3318_v20  ;;  %v1494_v19 = vsub.s32 0, %v1470_v4 }
 0x277   : > { %v1421_v25 = vmul.f32 %v1417_v21, %v1417_v21  ;;  %v1420_v26 = vmul.f32 %v1416_v22, %v1416_v22  ;;  %v1498_v22 = vsub.s32 1, %v1470_v4 }
 0x278   : > { %v1423_v27 = vrot.slane %v1419_v23, 4  ;;  %v1422_v28 = vmul.f32 %v1418_v24, %v1418_v24  ;;  %v1506_v24 = vsub.s32 3, %v1470_v4 }
 0x279   : > { %v1435_v29 = vrot.slane %v1421_v25, 4  ;;  %v1429_v30 = vrot.slane %v1420_v26, 4 }
 0x27a   : > { %v1424_v31 = vadd.f32 %v1423_v27, %v1419_v23  ;;  %v1441_v32 = vrot.slane %v1422_v28, 4  ;;  %v1502_v23 = vsub.s32 2, %v1470_v4 }
 0x27b   : > { %v1436_v33 = vadd.f32 %v1435_v29, %v1421_v25  ;;  %v1430_v34 = vadd.f32 %v1429_v30, %v1420_v26 }
 0x27c   : > { %v1425_v35 = vrot.slane %v1424_v31, 2  ;;  %v1442_v36 = vadd.f32 %v1441_v32, %v1422_v28 }
 0x27d   : > { %v1437_v37 = vrot.slane %v1436_v33, 2  ;;  %v1431_v38 = vrot.slane %v1430_v34, 2 }
 0x27e   : > { %v1426_v39 = vadd.f32 %v1425_v35, %v1424_v31  ;;  %v1443_v40 = vrot.slane %v1442_v36, 2 }
 0x27f   : > { %v1438_v41 = vadd.f32 %v1437_v37, %v1436_v33  ;;  %v1432_v42 = vadd.f32 %v1431_v38, %v1430_v34 }
 0x280   : > { %v1427_v43 = vrot.slane %v1426_v39, 1  ;;  %v1444_v44 = vadd.f32 %v1443_v40, %v1442_v36 }
 0x281   : > { %v1439_v45 = vrot.slane %v1438_v41, 1  ;;  %v1433_v46 = vrot.slane %v1432_v42, 1 }
 0x282   : > { %v1428_v47 = vadd.f32 %v1427_v43, %v1426_v39  ;;  %v1445_v48 = vrot.slane %v1444_v44, 1 }
 0x283   : > { %v1440_v49 = vadd.f32 %v1439_v45, %v1438_v41  ;;  %v1434_v50 = vadd.f32 %v1433_v46, %v1432_v42 }
 0x284   : > { %v1447_v51 = vmul.f32 0.125, %v1428_v47  ;;  %v1446_v53 = vadd.f32 %v1445_v48, %v1444_v44 }
 0x285   : > { %v1449_v56 = vmul.f32 0.125, %v1440_v49  ;;  %v1448_v57 = vmul.f32 0.125, %v1434_v50 }
 0x286   : > { %v1451_v59 = vadd.f32 1e-05, %v1447_v51  ;;  %v1450_v60 = vmul.f32 0.125, %v1446_v53 }
 0x287   : > { %v1453_v61 = vadd.f32 1e-05, %v1449_v56  ;;  %v1452_v62 = vadd.f32 1e-05, %v1448_v57 }
 0x288   : > { %2328 = vrsqrt.f32 %v1451_v59  ;;  %v1454_v63 = vadd.f32 1e-05, %v1450_v60 }
 0x289   : > { %2330 = vrsqrt.f32 %v1453_v61 }
 0x28a   : > { %2332 = vrsqrt.f32 %v1452_v62 }
 0x28b   : > { %2334 = vrsqrt.f32 %v1454_v63 }
 0x292   : > { %v2329_v5 = vpop.eup %2328 }
 0x293   : > { %v2331_v6 = vpop.eup %2330 }
 0x294   : > { %v2333_v8 = vpop.eup %2332 }
 0x295   : > { %v2335_v9 = vpop.eup %2334  ;;  %v1464_v10 = vcombine.low %v2329_v5, %v2333_v8 }
 0x296   : > { %v1465_v11 = vcombine.low %v2331_v6, %v2335_v9 }
 0x297   : > { %v1472_v12 = vrot.slane %v1464_v10, %v1471_v7 }
 0x298   : > { %v1479_v13 = vrot.slane %v1465_v11, %v1471_v7 }
 0x29a   : > { %v1480_v14 = vcombine.low %v1472_v12, %v1479_v13 }
 0x29c   : > { %v1487_v21 = vrot.slane %v1480_v14, %v1471_v7 }
 0x29e   : > { %v1489_v25 = vmul.f32 %v1487_v21, %v1459_v16 }
 0x2a0   : > { %v1495_v26 = vrot.slane %v1489_v25, %v1494_v19  ;;  %v1499_v27 = vrot.slane %v1489_v25, %v1498_v22  ;;  %v1503_v28 = vrot.slane %v1489_v25, %v1502_v23  ;;  %v1507_v29 = vrot.slane %v1489_v25, %v1506_v24 }
 0x2a2   : > { %v1512_v30 = vmul.f32 %v1495_v26, %v3310_v15  ;;  %v1513_v31 = vmul.f32 %v1499_v27, %v3314_v18  ;;  %v1514_v32 = vmul.f32 %v1503_v28, %v3312_v17  ;;  %v1515_v33 = vmul.f32 %v1507_v29, %v3318_v20  ;;  %v1490_v18 = vld [vmem:[%s2786_s25] sm:$0xf] }
 0x2a3   : > { %v1548_v34 = vmul.f32 %v1503_v28, %v3297_v54  ;;  %v1549_v35 = vmul.f32 %v1507_v29, %v3303_v58  ;;  %v1546_v36 = vmul.f32 %v1495_v26, %v3294_v52  ;;  %v1547_v37 = vmul.f32 %v1499_v27, %v3299_v55 }
 0x2a4   : > { %v1520_v38 = vcombine.low %v1512_v30, %v1513_v31  ;;  %v1521_v39 = vcombine.low %v1514_v32, %v1515_v33 }
 0x2a6   : > { %v1528_v40 = vrot.slane %v1520_v38, %v1471_v7  ;;  %v1535_v41 = vrot.slane %v1521_v39, %v1471_v7 }
 0x2a8   : > { %v1536_v15 = vcombine.low %v1528_v40, %v1535_v41 }
 0x2aa   : > { %v1543_v42 = vrot.slane %v1536_v15, %v1471_v7 }
 0x2ac   : > { %v1545_v43 = vsub.f32 %v1490_v18, %v1543_v42 }
 0x2ae   : > { %v1562_v54 = vrot.slane %v1545_v43, %v1502_v23  ;;  %v1566_v17 = vrot.slane %v1545_v43, %v1506_v24  ;;  %v1554_v58 = vrot.slane %v1545_v43, %v1494_v19  ;;  %v1558_v52 = vrot.slane %v1545_v43, %v1498_v22 }
 0x2b0   : > { %v1573_v20 = vadd.f32 %v1562_v54, %v1548_v34  ;;  %v1574_v55 = vadd.f32 %v1566_v17, %v1549_v35  ;;  %v1571_v44 = vadd.f32 %v1554_v58, %v1546_v36  ;;  %v1572_v45 = vadd.f32 %v1558_v52, %v1547_v37 }
 0x2b2   : > { %1578 = vst [vmem:[%s301_s7 + $0x18] sm:$0xff] %v1574_v55  ;;  %1577 = vst [vmem:[%s301_s7 + $0x10] sm:$0xff] %v1573_v20 }
 0x2b3   : > { %1575 = vst [vmem:[%s301_s7] sm:$0xff] %v1571_v44  ;;  %1576 = vst [vmem:[%s301_s7 + $0x8] sm:$0xff] %v1572_v45 }
 0x2b4   : > { %2467 = shalt.err (!%p2464_p2)
}
 0x2b5   : > { %s2468_s9 = scalar_lea.hbm %s3341_s21, 512  ;;  %s2472_s30 = scalar_lea.hbm %s3389_s4, 1024 }
 0x2b6   : > { %p2469_p1 = scmp.ne.s32.totalorder %s3341_s21, %s2468_s9  ;;  %p2473_p0 = scmp.lt.u32.totalorder %s3341_s21, %s3389_s4 }
 0x2b7   : > { %p2474_p3 = scmp.lt.u32.totalorder %s2472_s30, %s2468_s9  ;;  %p2476_p4 = scmp.lt.u32.totalorder %s2468_s9, %s3341_s21 }
 0x2b8   : > { %p2470_p11 = pnand %p2469_p1, %p3421_p9 }
 0x2b9   : > { %p2475_p13 = por %p2474_p3, %p2473_p0 }
 0x2ba   : > { %p2471_p5 = pneg %p2470_p11 }
 0x2bb   : > { %p2477_p12 = por %p2476_p4, %p2475_p13 }
 0x2bd   : > { %p2478_p10 = pnand %p2477_p12, %p2471_p5 }
 0x2bf   : > { %2481 = shalt.err (!%p2478_p10)
}
 0x2c0   : > { %2267 = dma.vmem_to_hbm [thread:$0]  (%p3421_p9), %s3343_s23, 512, %s3341_s21, %s1580_s5  }
 0x2c1 PF: > { %s1606_s17 = sand.u32 1, %s2516_s15   ;;  %p3422_p7 = scmp.ne.s32.totalorder %s3410_s6, 0 }
 0x2c2   : > { %p3423_p6 = scmp.ge.s32.totalorder %s2528_s18, 2  ;;  %s1607_s12 = scalar_lea.sflag [#allocation4], %s1606_s17 }
 0x2c4   : > { %p2284_p8 = pnand %p3423_p6, %p3422_p7 }
 0x2c6   : > { %2511 = dma.done.wait (!%p2284_p8), %s1607_s12, 512  }
 0x2c7   : > { %2513 = vsyncadd (!%p2284_p8), %s1607_s12, 4294966784  ;;  %s3424_s25 = sld [smem:[#allocation15_spill]]  ;;  %s3425_s17 = sld [smem:[#allocation16_spill]] }
 0x2c8   : > { %p21_p2 = scmp.ge.s32.totalorder %s2585_s19, 4   ;;  %s3426_s15 = smov %s2520_s16 }
 0x2c9   : > { %s3428_s18 = smov %s2585_s19 }
 0x2ca   :  { %23 = sbr.rel (!%p21_p2) target bundleno = 10 (0xa), region = 110 }
 0x2cd   : > { %s3427_s16 = smov %s3424_s25 }
 0x2d1   :  { %1612 = vsyncpa [#allocation3], 1 }
 0x2d2   :  { %1614 = vsyncpa [#allocation3 + $0x1], 1 }
 0x2d3   :  { %1615 = vsyncpa [#allocation6], 1 }
 0x2d4   :  { %1617 = vsyncpa [#allocation6 + $0x1], 1 }
 0x2d5   :  { %1618 = vsyncpa [#allocation9], 1 }
 0x2d6   :  { %1620 = vsyncpa [#allocation9 + $0x1], 1 }
 0x2d7   :  { %1621 = vsyncpa [#allocation4], 1 }
 0x2d8   :  { %1623 = vsyncpa [#allocation4 + $0x1], 1 }

</bundles_post_ra>
